<compile_context>
chip_gen: v7x
topology: tpu7x:2x2x1
jax: 0.10.0
libtpu: 0.0.40
codegen_flags: <defaults>
</compile_context>

<pallas_src>
import jax
import jax.numpy as jnp
from jax.experimental import pallas as pl
from jax.experimental.pallas import tpu as pltpu


def generator_kernel(x_ref,
                     w1_ref, b1_ref,
                     w2_ref, b2_ref,
                     w3_ref, b3_ref,
                     w4_ref, b4_ref,
                     o_ref):
    # x tile and weights are bf16; all matmuls accumulate in f32 on the MXU.
    x = x_ref[...]

    h = jnp.dot(x, w1_ref[...], preferred_element_type=jnp.float32) + b1_ref[...]
    h = jnp.maximum(h, 0.0)                                   # ReLU (f32 VPU)

    h = jnp.dot(h.astype(jnp.bfloat16), w2_ref[...],
                preferred_element_type=jnp.float32) + b2_ref[...]
    h = jnp.maximum(h, 0.0)

    h = jnp.dot(h.astype(jnp.bfloat16), w3_ref[...],
                preferred_element_type=jnp.float32) + b3_ref[...]
    h = jnp.maximum(h, 0.0)

    h = jnp.dot(h.astype(jnp.bfloat16), w4_ref[...],
                preferred_element_type=jnp.float32) + b4_ref[...]
    # sigmoid = 1 / (1 + exp(-h)); exp + approx reciprocal both run on the EUP.
    o_ref[...] = pl.reciprocal(1.0 + jnp.exp(-h), approx=True).astype(o_ref.dtype)


def _round_up(n, m):
    return (n + m - 1) // m * m


def generator_forward(x, params, *, batch_tile=512):
    """x: (B, 128) f32. params: list of (W_t, b), W_t: (in, out), b: (1, out) f32.

    Returns (B, 128) f32.  `batch_tile` is a tuning knob (multiple of 8);
    512 is a good default across v5e/v6e/v7x: it fills the MXU while keeping
    several parallel grid steps at realistic batch sizes.
    """
    (w1, b1), (w2, b2), (w3, b3), (w4, b4) = params
    B, D_in = x.shape
    assert D_in == 128
    D_out = w4.shape[1]

    # Clamp the tile for tiny batches and pad B up to a multiple of the tile.
    bt = min(batch_tile, _round_up(B, 8))
    B_pad = _round_up(B, bt)
    if B_pad != B:
        x = jnp.pad(x, ((0, B_pad - B), (0, 0)))

    # bf16 matmul operands; biases stay f32 (added to the f32 accumulator).
    x_bf = x.astype(jnp.bfloat16)
    w1b, w2b, w3b, w4b = (w.astype(jnp.bfloat16) for w in (w1, w2, w3, w4))

    grid = (B_pad // bt,)

    def weight_spec(arr):
        # Constant index_map: the whole (small) weight/bias is resident in VMEM
        # and only DMA'd once across the grid.
        return pl.BlockSpec(arr.shape, lambda i: (0, 0))

    out = pl.pallas_call(
        generator_kernel,
        out_shape=jax.ShapeDtypeStruct((B_pad, D_out), jnp.float32),
        grid_spec=pltpu.PrefetchScalarGridSpec(
            num_scalar_prefetch=0,
            grid=grid,
            in_specs=[
                pl.BlockSpec((bt, D_in), lambda i: (i, 0)),       # x tile
                weight_spec(w1b), weight_spec(b1),
                weight_spec(w2b), weight_spec(b2),
                weight_spec(w3b), weight_spec(b3),
                weight_spec(w4b), weight_spec(b4),
            ],
            out_specs=pl.BlockSpec((bt, D_out), lambda i: (i, 0)),
        ),
        compiler_params=pltpu.CompilerParams(
            dimension_semantics=("parallel",),
            vmem_limit_bytes=32 * 1024 * 1024,
        ),
    )(x_bf, w1b, b1, w2b, b2, w3b, b3, w4b, b4)

    return out[:B] if B_pad != B else out


def init_params(key):
    """Deterministic init mimicking nn.Linear's uniform(-1/sqrt(fan_in), 1/sqrt(fan_in)).
    Weights returned already transposed to (in_features, out_features)."""
    dims = [(128, 256), (256, 512), (512, 1024), (1024, 128)]
    params = []
    for (fan_in, fan_out) in dims:
        key, kw, kb = jax.random.split(key, 3)
        bound = 1.0 / jnp.sqrt(float(fan_in))
        w = jax.random.uniform(kw, (fan_in, fan_out), jnp.float32, -bound, bound)
        b = jax.random.uniform(kb, (1, fan_out), jnp.float32, -bound, bound)
        params.append((w, b))
    return params


def reference_forward(x, params):
    (w1, b1), (w2, b2), (w3, b3), (w4, b4) = params
    h = jnp.maximum(x @ w1 + b1, 0.0)
    h = jnp.maximum(h @ w2 + b2, 0.0)
    h = jnp.maximum(h @ w3 + b3, 0.0)
    return jax.nn.sigmoid(h @ w4 + b4)


if __name__ == "__main__":
    key = jax.random.PRNGKey(0)
    k_x, k_x2, k_p = jax.random.split(key, 3)

    params = init_params(k_p)

    # Small single-tile correctness check.
    B = 8
    x = jax.random.normal(k_x, (B, 128), dtype=jnp.float32)
    out = jax.block_until_ready(generator_forward(x, params))
    ref = reference_forward(x, params)
    assert out.shape == (B, 128)
    # bf16 matmul operands + approx reciprocal -> loosened tolerance vs f32 ref.
    assert jnp.allclose(out, ref, atol=2e-2), float(jnp.abs(out - ref).max())

    # Exercise the padded, multi-step tiled path (non-multiple batch, grid > 1).
    B2 = 200
    x2 = jax.random.normal(k_x2, (B2, 128), dtype=jnp.float32)
    out2 = jax.block_until_ready(generator_forward(x2, params, batch_tile=64))
    ref2 = reference_forward(x2, params)
    assert out2.shape == (B2, 128)
    assert jnp.allclose(out2, ref2, atol=2e-2), float(jnp.abs(out2 - ref2).max())

    print("KERNEL_OK")
</pallas_src>

<mosaic_0001>
module attributes {stable_mosaic.version = 11 : i64} {
  func.func @generator_kernel(%arg0: i32, %arg1: memref<8x128xbf16, #tpu.memory_space<vmem>>, %arg2: memref<128x256xbf16, #tpu.memory_space<vmem>>, %arg3: memref<1x256xf32, #tpu.memory_space<vmem>>, %arg4: memref<256x512xbf16, #tpu.memory_space<vmem>>, %arg5: memref<1x512xf32, #tpu.memory_space<vmem>>, %arg6: memref<512x1024xbf16, #tpu.memory_space<vmem>>, %arg7: memref<1x1024xf32, #tpu.memory_space<vmem>>, %arg8: memref<1024x128xbf16, #tpu.memory_space<vmem>>, %arg9: memref<1x128xf32, #tpu.memory_space<vmem>>, %arg10: memref<8x128xf32, #tpu.memory_space<vmem>>) attributes {dimension_semantics = [#tpu.dimension_semantics<parallel>], iteration_bounds = array<i64: 1>, scalar_prefetch = 0 : i64, scratch_operands = 0 : i64, tpu.core_type = #tpu.core_type<tc>, window_params = [{transform_indices = @transform_0, window_bounds = array<i64: 8, 128>}, {pipeline_mode = #tpu.pipeline_mode<synchronous>, transform_indices = @transform_1, window_bounds = array<i64: 128, 256>}, {pipeline_mode = #tpu.pipeline_mode<synchronous>, transform_indices = @transform_2, window_bounds = array<i64: 1, 256>}, {pipeline_mode = #tpu.pipeline_mode<synchronous>, transform_indices = @transform_3, window_bounds = array<i64: 256, 512>}, {pipeline_mode = #tpu.pipeline_mode<synchronous>, transform_indices = @transform_4, window_bounds = array<i64: 1, 512>}, {pipeline_mode = #tpu.pipeline_mode<synchronous>, transform_indices = @transform_5, window_bounds = array<i64: 512, 1024>}, {pipeline_mode = #tpu.pipeline_mode<synchronous>, transform_indices = @transform_6, window_bounds = array<i64: 1, 1024>}, {pipeline_mode = #tpu.pipeline_mode<synchronous>, transform_indices = @transform_7, window_bounds = array<i64: 1024, 128>}, {pipeline_mode = #tpu.pipeline_mode<synchronous>, transform_indices = @transform_8, window_bounds = array<i64: 1, 128>}, {transform_indices = @transform_9, window_bounds = array<i64: 8, 128>}]} {
    %c0 = arith.constant 0 : index
    %c0_0 = arith.constant 0 : index
    %0 = vector.load %arg1[%c0, %c0_0] : memref<8x128xbf16, #tpu.memory_space<vmem>>, vector<8x128xbf16>
    %c0_1 = arith.constant 0 : index
    %c0_2 = arith.constant 0 : index
    %1 = vector.load %arg2[%c0_1, %c0_2] : memref<128x256xbf16, #tpu.memory_space<vmem>>, vector<128x256xbf16>
    %cst = arith.constant dense<0.000000e+00> : vector<8x256xf32>
    %2 = tpu.matmul %0, %1, %cst {dimension_numbers = #tpu.dot_dimension_numbers<[1], [0], [0], [1], [0, 0, 1, 1], [], []>} : vector<8x128xbf16>, vector<128x256xbf16>, vector<8x256xf32> -> vector<8x256xf32>
    %c0_3 = arith.constant 0 : index
    %c0_4 = arith.constant 0 : index
    %3 = vector.load %arg3[%c0_3, %c0_4] : memref<1x256xf32, #tpu.memory_space<vmem>>, vector<1x256xf32>
    %4 = vector.broadcast %3 : vector<1x256xf32> to vector<8x256xf32>
    %5 = arith.addf %2, %4 : vector<8x256xf32>
    %cst_5 = arith.constant 0.000000e+00 : f32
    %6 = vector.broadcast %cst_5 : f32 to vector<8x256xf32>
    %7 = arith.maximumf %5, %6 : vector<8x256xf32>
    %8 = arith.truncf %7 : vector<8x256xf32> to vector<8x256xbf16>
    %c0_6 = arith.constant 0 : index
    %c0_7 = arith.constant 0 : index
    %9 = vector.load %arg4[%c0_6, %c0_7] : memref<256x512xbf16, #tpu.memory_space<vmem>>, vector<256x512xbf16>
    %cst_8 = arith.constant dense<0.000000e+00> : vector<8x512xf32>
    %10 = tpu.matmul %8, %9, %cst_8 {dimension_numbers = #tpu.dot_dimension_numbers<[1], [0], [0], [1], [0, 0, 1, 1], [], []>} : vector<8x256xbf16>, vector<256x512xbf16>, vector<8x512xf32> -> vector<8x512xf32>
    %c0_9 = arith.constant 0 : index
    %c0_10 = arith.constant 0 : index
    %11 = vector.load %arg5[%c0_9, %c0_10] : memref<1x512xf32, #tpu.memory_space<vmem>>, vector<1x512xf32>
    %12 = vector.broadcast %11 : vector<1x512xf32> to vector<8x512xf32>
    %13 = arith.addf %10, %12 : vector<8x512xf32>
    %cst_11 = arith.constant 0.000000e+00 : f32
    %14 = vector.broadcast %cst_11 : f32 to vector<8x512xf32>
    %15 = arith.maximumf %13, %14 : vector<8x512xf32>
    %16 = arith.truncf %15 : vector<8x512xf32> to vector<8x512xbf16>
    %c0_12 = arith.constant 0 : index
    %c0_13 = arith.constant 0 : index
    %17 = vector.load %arg6[%c0_12, %c0_13] : memref<512x1024xbf16, #tpu.memory_space<vmem>>, vector<512x1024xbf16>
    %cst_14 = arith.constant dense<0.000000e+00> : vector<8x1024xf32>
    %18 = tpu.matmul %16, %17, %cst_14 {dimension_numbers = #tpu.dot_dimension_numbers<[1], [0], [0], [1], [0, 0, 1, 1], [], []>} : vector<8x512xbf16>, vector<512x1024xbf16>, vector<8x1024xf32> -> vector<8x1024xf32>
    %c0_15 = arith.constant 0 : index
    %c0_16 = arith.constant 0 : index
    %19 = vector.load %arg7[%c0_15, %c0_16] : memref<1x1024xf32, #tpu.memory_space<vmem>>, vector<1x1024xf32>
    %20 = vector.broadcast %19 : vector<1x1024xf32> to vector<8x1024xf32>
    %21 = arith.addf %18, %20 : vector<8x1024xf32>
    %cst_17 = arith.constant 0.000000e+00 : f32
    %22 = vector.broadcast %cst_17 : f32 to vector<8x1024xf32>
    %23 = arith.maximumf %21, %22 : vector<8x1024xf32>
    %24 = arith.truncf %23 : vector<8x1024xf32> to vector<8x1024xbf16>
    %c0_18 = arith.constant 0 : index
    %c0_19 = arith.constant 0 : index
    %25 = vector.load %arg8[%c0_18, %c0_19] : memref<1024x128xbf16, #tpu.memory_space<vmem>>, vector<1024x128xbf16>
    %cst_20 = arith.constant dense<0.000000e+00> : vector<8x128xf32>
    %26 = tpu.matmul %24, %25, %cst_20 {dimension_numbers = #tpu.dot_dimension_numbers<[1], [0], [0], [1], [0, 0, 1, 1], [], []>} : vector<8x1024xbf16>, vector<1024x128xbf16>, vector<8x128xf32> -> vector<8x128xf32>
    %c0_21 = arith.constant 0 : index
    %c0_22 = arith.constant 0 : index
    %27 = vector.load %arg9[%c0_21, %c0_22] : memref<1x128xf32, #tpu.memory_space<vmem>>, vector<1x128xf32>
    %28 = vector.broadcast %27 : vector<1x128xf32> to vector<8x128xf32>
    %29 = arith.addf %26, %28 : vector<8x128xf32>
    %cst_23 = arith.constant 0.000000e+00 : f32
    %30 = vector.broadcast %cst_23 : f32 to vector<8x128xf32>
    %31 = arith.subf %30, %29 : vector<8x128xf32>
    %32 = math.exp %31 : vector<8x128xf32>
    %cst_24 = arith.constant 1.000000e+00 : f32
    %33 = vector.broadcast %cst_24 : f32 to vector<8x128xf32>
    %34 = arith.addf %33, %32 : vector<8x128xf32>
    %35 = tpu.reciprocal %34 {approx = true} : vector<8x128xf32> -> vector<8x128xf32>
    %c0_25 = arith.constant 0 : index
    %c0_26 = arith.constant 0 : index
    %36 = vector.load %arg10[%c0_25, %c0_26] : memref<8x128xf32, #tpu.memory_space<vmem>>, vector<8x128xf32>
    tpu.vector_store %arg10[%c0_25, %c0_26], %35 {strides = array<i32>} : memref<8x128xf32, #tpu.memory_space<vmem>>, vector<8x128xf32>,
    return
  }
  func.func @transform_0(%arg0: i32) -> (i32, i32) {
    %c0_i32 = arith.constant 0 : i32
    %c0_i32_0 = arith.constant 0 : i32
    return %arg0, %c0_i32 : i32, i32
  }
  func.func @transform_1(%arg0: i32) -> (i32, i32) {
    %c0_i32 = arith.constant 0 : i32
    %c0_i32_0 = arith.constant 0 : i32
    %c0_i32_1 = arith.constant 0 : i32
    return %c0_i32, %c0_i32_0 : i32, i32
  }
  func.func @transform_2(%arg0: i32) -> (i32, i32) {
    %c0_i32 = arith.constant 0 : i32
    %c0_i32_0 = arith.constant 0 : i32
    %c0_i32_1 = arith.constant 0 : i32
    return %c0_i32, %c0_i32_0 : i32, i32
  }
  func.func @transform_3(%arg0: i32) -> (i32, i32) {
    %c0_i32 = arith.constant 0 : i32
    %c0_i32_0 = arith.constant 0 : i32
    %c0_i32_1 = arith.constant 0 : i32
    return %c0_i32, %c0_i32_0 : i32, i32
  }
  func.func @transform_4(%arg0: i32) -> (i32, i32) {
    %c0_i32 = arith.constant 0 : i32
    %c0_i32_0 = arith.constant 0 : i32
    %c0_i32_1 = arith.constant 0 : i32
    return %c0_i32, %c0_i32_0 : i32, i32
  }
  func.func @transform_5(%arg0: i32) -> (i32, i32) {
    %c0_i32 = arith.constant 0 : i32
    %c0_i32_0 = arith.constant 0 : i32
    %c0_i32_1 = arith.constant 0 : i32
    return %c0_i32, %c0_i32_0 : i32, i32
  }
  func.func @transform_6(%arg0: i32) -> (i32, i32) {
    %c0_i32 = arith.constant 0 : i32
    %c0_i32_0 = arith.constant 0 : i32
    %c0_i32_1 = arith.constant 0 : i32
    return %c0_i32, %c0_i32_0 : i32, i32
  }
  func.func @transform_7(%arg0: i32) -> (i32, i32) {
    %c0_i32 = arith.constant 0 : i32
    %c0_i32_0 = arith.constant 0 : i32
    %c0_i32_1 = arith.constant 0 : i32
    return %c0_i32, %c0_i32_0 : i32, i32
  }
  func.func @transform_8(%arg0: i32) -> (i32, i32) {
    %c0_i32 = arith.constant 0 : i32
    %c0_i32_0 = arith.constant 0 : i32
    %c0_i32_1 = arith.constant 0 : i32
    return %c0_i32, %c0_i32_0 : i32, i32
  }
  func.func @transform_9(%arg0: i32) -> (i32, i32) {
    %c0_i32 = arith.constant 0 : i32
    %c0_i32_0 = arith.constant 0 : i32
    return %arg0, %c0_i32 : i32, i32
  }
}

</mosaic_0001>

<bundles_post_ra>
// kernel: tpu_custom_call.1
= control target key start
LH: loop header
LB: loop body
LE: loop exit
PB: predicated region body
PF: predicated region fallthrough
CT: control target
= control target key end

     0   :  { %14 = vsyncpa [#allocation3], 0  ;;  %s4457_s0 = inlined_call_operand.hbm [shape: bf16[8,128], index: 0, kind: input, shape index: {}]   ;;  %s4458_s1 = inlined_call_operand.hbm [shape: bf16[128,256], index: 1, kind: input, shape index: {}]   ;;  %s4459_s2 = inlined_call_operand.vmem [shape: f32[1,256], index: 2, kind: input, shape index: {}]   ;;  %s4460_s3 = inlined_call_operand.hbm [shape: bf16[256,512], index: 3, kind: input, shape index: {}]   ;;  %s4461_s4 = inlined_call_operand.vmem [shape: f32[1,512], index: 4, kind: input, shape index: {}]   ;;  %s4462_s5 = inlined_call_operand.hbm [shape: bf16[512,1024], index: 5, kind: input, shape index: {}]   ;;  %s4463_s6 = inlined_call_operand.vmem [shape: f32[1,1024], index: 6, kind: input, shape index: {}]   ;;  %s4464_s7 = inlined_call_operand.hbm [shape: bf16[1024,128], index: 7, kind: input, shape index: {}]   ;;  %s4465_s8 = inlined_call_operand.vmem [shape: f32[1,128], index: 8, kind: input, shape index: {}]   ;;  %s4466_s9 = inlined_call_operand.hbm [shape: f32[8,128], index: 9, kind: output, shape index: {}]  }
   0x1   :  { %15 = vsyncpa [#allocation6], 0 }
   0x2   :  { %16 = vsyncpa [#allocation9], 0 }
   0x3   :  { %17 = vsyncpa [#allocation4], 0  ;;  %s4230_s30 = smov [#allocation5]   ;;  %s4090_s13 = scalar_lea.hbm %s4458_s1, 2048 }
   0x4   :  { %s33_s10 = sshll.u32 %s4230_s30, 4  ;;  %p4091_p0 = scmp.ne.s32.totalorder %s4458_s1, %s4090_s13  ;;  %s34_s10 = int_to_ptr.vmem [resolvable:$true] %s33_s10 }
   0x5   :  { %p4094_p1 = scmp.lt.u32.totalorder %s4090_s13, %s4458_s1 }
   0x7   :  { %p4096_p2 = pnand %p4094_p1, %p4091_p0 }
   0x9   :  { %4099 = shalt.err (!%p4096_p2)
}
   0xa   :  { %s4100_s18 = scalar_lea.vmem %s34_s10, 2048  ;;  %p4105_p4 = scmp.lt.s32.totalorder %s34_s10, %s34_s10 }
   0xb   :  { %p4101_p3 = scmp.ne.s32.totalorder %s34_s10, %s4100_s18  ;;  %p4106_p5 = scmp.lt.s32.totalorder %s4100_s18, %s4100_s18 }
   0xd   :  { %p4107_p6 = por %p4106_p5, %p4105_p4 }
   0xf   :  { %p4108_p7 = pnand %p4107_p6, %p4101_p3 }
  0x11   :  { %4111 = shalt.err (!%p4108_p7)
}
  0x12   :  { %s4231_s19 = smov 128   ;;  %s4232_s20 = smov 8  }
  0x13   :  { %39 = dma.hbm_to_vmem [thread:$0]  %s4458_s1, 2048, %s34_s10, [#allocation6], %s4231_s19, %s4231_s19, %s4232_s20  }
  0x14   :  { %s4233_s23 = smov [#allocation8]   ;;  %s4112_s27 = scalar_lea.hbm %s4462_s5, 32768 }
  0x15   :  { %s61_s24 = sshll.u32 %s4233_s23, 4  ;;  %p4113_p8 = scmp.ne.s32.totalorder %s4462_s5, %s4112_s27  ;;  %s62_s24 = int_to_ptr.vmem [resolvable:$true] %s61_s24 }
  0x16   :  { %p4116_p9 = scmp.lt.u32.totalorder %s4112_s27, %s4462_s5 }
  0x18   :  { %p4118_p10 = pnand %p4116_p9, %p4113_p8 }
  0x1a   :  { %4121 = shalt.err (!%p4118_p10)
}
  0x1b   :  { %s4122_s12 = scalar_lea.vmem %s62_s24, 32768  ;;  %p4127_p12 = scmp.lt.s32.totalorder %s62_s24, %s62_s24 }
  0x1c   :  { %p4123_p11 = scmp.ne.s32.totalorder %s62_s24, %s4122_s12  ;;  %p4128_p13 = scmp.lt.s32.totalorder %s4122_s12, %s4122_s12 }
  0x1e   :  { %p4129_p0 = por %p4128_p13, %p4127_p12 }
  0x20   :  { %p4130_p1 = pnand %p4129_p0, %p4123_p11 }
  0x22   :  { %4133 = shalt.err (!%p4130_p1)
}
  0x23   :  { %s4234_s1 = smov 512   ;;  %s4235_s10 = smov 32  }
  0x24   :  { %67 = dma.hbm_to_vmem [thread:$0]  %s4462_s5, 32768, %s62_s24, [#allocation9], %s4234_s1, %s4234_s1, %s4235_s10  }
  0x25   :  { %s4236_s15 = smov [#allocation2]   ;;  %s4237_s17 = smov [#allocation7]  }
  0x26   :  { %s24_s16 = sshll.u32 %s4236_s15, 4  ;;  %s47_s18 = sshll.u32 %s4237_s17, 4  ;;  %s25_s16 = int_to_ptr.vmem [resolvable:$true] %s24_s16  ;;  %s4319_s18 = int_to_ptr.vmem [resolvable:$true] %s47_s18 }
  0x27   :  { %s4134_s21 = scalar_lea.hbm %s4457_s0, 64 }
  0x28   :  { %p4135_p2 = scmp.ne.s32.totalorder %s4457_s0, %s4134_s21  ;;  %p4138_p3 = scmp.lt.u32.totalorder %s4134_s21, %s4457_s0 }
  0x2a   :  { %p4140_p4 = pnand %p4138_p3, %p4135_p2 }
  0x2c   :  { %4143 = shalt.err (!%p4140_p4)
}
  0x2d   :  { %s4144_s5 = scalar_lea.vmem %s25_s16, 64  ;;  %p4149_p6 = scmp.lt.s32.totalorder %s25_s16, %s25_s16 }
  0x2e   :  { %p4145_p5 = scmp.ne.s32.totalorder %s25_s16, %s4144_s5  ;;  %p4150_p7 = scmp.lt.s32.totalorder %s4144_s5, %s4144_s5 }
  0x30   :  { %p4151_p8 = por %p4150_p7, %p4149_p6 }
  0x32   :  { %p4152_p9 = pnand %p4151_p8, %p4145_p5 }
  0x34   :  { %4155 = shalt.err (!%p4152_p9)
}
  0x35   :  { %27 = dma.hbm_to_vmem [thread:$0]  %s4457_s0, 64, %s25_s16, [#allocation3]  }
  0x36   :  { %s4156_s30 = scalar_lea.hbm %s4460_s3, 8192 }
  0x37   :  { %p4157_p10 = scmp.ne.s32.totalorder %s4460_s3, %s4156_s30  ;;  %p4160_p11 = scmp.lt.u32.totalorder %s4156_s30, %s4460_s3 }
  0x39   :  { %p4162_p12 = pnand %p4160_p11, %p4157_p10 }
  0x3b   :  { %4165 = shalt.err (!%p4162_p12)
}
  0x3c   :  { %s4166_s13 = scalar_lea.vmem %s4319_s18, 8192  ;;  %p4171_p0 = scmp.lt.s32.totalorder %s4319_s18, %s4319_s18 }
  0x3d   :  { %p4167_p13 = scmp.ne.s32.totalorder %s4319_s18, %s4166_s13  ;;  %p4172_p1 = scmp.lt.s32.totalorder %s4166_s13, %s4166_s13 }
  0x3f   :  { %p4173_p2 = por %p4172_p1, %p4171_p0 }
  0x41   :  { %p4174_p3 = pnand %p4173_p2, %p4167_p13 }
  0x43   :  { %4177 = shalt.err (!%p4174_p3)
}
  0x44   :  { %s4238_s0 = smov 256   ;;  %s4239_s14 = smov 16  }
  0x45   :  { %53 = dma.hbm_to_vmem [thread:$0]  %s4460_s3, 8192, %s4319_s18, [#allocation6], %s4238_s0, %s4238_s0, %s4239_s14  }
  0x46   :  { %s4240_s17 = smov [#allocation10]   ;;  %s4178_s22 = scalar_lea.hbm %s4464_s7, 8192 }
  0x47   :  { %s75_s19 = sshll.u32 %s4240_s17, 4  ;;  %p4179_p4 = scmp.ne.s32.totalorder %s4464_s7, %s4178_s22  ;;  %s76_s19 = int_to_ptr.vmem [resolvable:$true] %s75_s19 }
  0x48   :  { %p4182_p5 = scmp.lt.u32.totalorder %s4178_s22, %s4464_s7 }
  0x4a   :  { %p4184_p6 = pnand %p4182_p5, %p4179_p4 }
  0x4c   :  { %4187 = shalt.err (!%p4184_p6)
}
  0x4d   :  { %s4188_s24 = scalar_lea.vmem %s76_s19, 8192  ;;  %p4193_p8 = scmp.lt.s32.totalorder %s76_s19, %s76_s19 }
  0x4e   :  { %p4189_p7 = scmp.ne.s32.totalorder %s76_s19, %s4188_s24  ;;  %p4194_p9 = scmp.lt.s32.totalorder %s4188_s24, %s4188_s24 }
  0x50   :  { %p4195_p10 = por %p4194_p9, %p4193_p8 }
  0x52   :  { %p4196_p11 = pnand %p4195_p10, %p4189_p7 }
  0x54   :  { %4199 = shalt.err (!%p4196_p11)
}
  0x55   :  { %s4241_s3 = smov 64   ;;  %s4242_s18 = smov 4  }
  0x56   :  { %81 = dma.hbm_to_vmem [thread:$0]  %s4464_s7, 8192, %s76_s19, [#allocation9], %s4241_s3, %s4241_s3, %s4242_s18  }
  0x57   :  { %4222 = dma.done.wait [#allocation3], 64  }
  0x58   :  { %4223 = vsyncadd [#allocation3], 4294967232 }
  0x59   :  { %4224 = dma.done.wait [#allocation6], 10240  }
  0x5a   :  { %4225 = vsyncadd [#allocation6], 4294957056 }
  0x5b   :  { %4226 = dma.done.wait [#allocation9], 40960  }
  0x5c   :  { %4227 = vsyncadd [#allocation9], 4294926336  ;;  %v4243_v0 = vmov 0   ;;  %v3902_v1 = vld [vmem:[#allocation5 + $0x4] ss:$8 sps:$4 sm:$0xff]  }
  0x5d   :  { %241 = vmatprep.mubr.bf16.mxu0 %v4243_v0  ;;  %v3904_v2 = vld [vmem:[#allocation5] ss:$8 sps:$4 sm:$0xff]   ;;  %209 = vmatprep.subr.bf16.mxu0 %v3902_v1  ;;  %v3905_v3 = vld [vmem:[#allocation5 + $0x14] ss:$8 sps:$4 sm:$0xff]   ;;  %v3907_v4 = vld [vmem:[#allocation5 + $0x10] ss:$8 sps:$4 sm:$0xff]  }
  0x5e   :  { %210 = vmatpush1.bf16.msra.mxu0 %v3904_v2  ;;  %v3908_v5 = vld [vmem:[#allocation5 + $0x24] ss:$8 sps:$4 sm:$0xff]   ;;  %v3910_v6 = vld [vmem:[#allocation5 + $0x20] ss:$8 sps:$4 sm:$0xff]   ;;  %v3911_v7 = vld [vmem:[#allocation5 + $0x34] ss:$8 sps:$4 sm:$0xff]  }
  0x5f   :  { %211 = vmatprep.subr.bf16.mxu0 %v3905_v3  ;;  %v3913_v8 = vld [vmem:[#allocation5 + $0x30] ss:$8 sps:$4 sm:$0xff]   ;;  %v3926_v9 = vld [vmem:[#allocation7 + $0x4] ss:$16 sps:$4 sm:$0xff]   ;;  %v3916_v13 = vld [vmem:[#allocation5 + $0x40] ss:$8 sps:$4 sm:$0xff]  }
  0x60   :  { %v3914_v10 = vld [vmem:[#allocation5 + $0x44] ss:$8 sps:$4 sm:$0xff]   ;;  %660 = vmatprep.subr.bf16.mxu1 %v3926_v9  ;;  %v3931_v11 = vld [vmem:[#allocation7] ss:$16 sps:$4 sm:$0xff]   ;;  %v3917_v14 = vld [vmem:[#allocation5 + $0x54] ss:$8 sps:$4 sm:$0xff]  }
  0x61   :  { %v3932_v12 = vld [vmem:[#allocation7 + $0x24] ss:$16 sps:$4 sm:$0xff]   ;;  %661 = vmatpush1.bf16.msra.mxu1 %v3931_v11  ;;  %v3937_v15 = vld [vmem:[#allocation7 + $0x20] ss:$16 sps:$4 sm:$0xff]   ;;  %v3930_v26 = vld [vmem:[#allocation7 + $0xc] ss:$16 sps:$4 sm:$0xff]  }
  0x62   :  { %212 = vmatpush1.bf16.msra.mxu0 %v3907_v4  ;;  %662 = vmatprep.subr.bf16.mxu1 %v3932_v12  ;;  %v3938_v16 = vld [vmem:[#allocation7 + $0x44] ss:$16 sps:$4 sm:$0xff]   ;;  %v3919_v17 = vld [vmem:[#allocation5 + $0x50] ss:$8 sps:$4 sm:$0xff]   ;;  %v3922_v21 = vld [vmem:[#allocation5 + $0x60] ss:$8 sps:$4 sm:$0xff]  }
  0x63   :  { %213 = vmatprep.subr.bf16.mxu0 %v3908_v5  ;;  %v3920_v18 = vld [vmem:[#allocation5 + $0x64] ss:$8 sps:$4 sm:$0xff]   ;;  %v3943_v19 = vld [vmem:[#allocation7 + $0x40] ss:$16 sps:$4 sm:$0xff]   ;;  %v3923_v22 = vld [vmem:[#allocation5 + $0x74] ss:$8 sps:$4 sm:$0xff]  }
  0x64   :  { %v3944_v20 = vld [vmem:[#allocation7 + $0x64] ss:$16 sps:$4 sm:$0xff]   ;;  %v3949_v23 = vld [vmem:[#allocation7 + $0x60] ss:$16 sps:$4 sm:$0xff]   ;;  %v100_v29 = vld [vmem:[#allocation2] sm:$0xf] }
  0x65   :  { %663 = vmatpush1.bf16.msra.mxu1 %v3937_v15  ;;  %v3950_v24 = vld [vmem:[#allocation7 + $0x84] ss:$16 sps:$4 sm:$0xff]   ;;  %v3925_v25 = vld [vmem:[#allocation5 + $0x70] ss:$8 sps:$4 sm:$0xff]   ;;  %v3936_v31 = vld [vmem:[#allocation7 + $0x2c] ss:$16 sps:$4 sm:$0xff]  }
  0x66   :  { %214 = vmatpush1.bf16.msra.mxu0 %v3910_v6  ;;  %664 = vmatprep.subr.bf16.mxu1 %v3938_v16  ;;  %v3955_v27 = vld [vmem:[#allocation7 + $0x80] ss:$16 sps:$4 sm:$0xff]   ;;  %v3956_v28 = vld [vmem:[#allocation7 + $0xa4] ss:$16 sps:$4 sm:$0xff]   ;;  %v3928_v30 = vld [vmem:[#allocation7 + $0x8] ss:$16 sps:$4 sm:$0xff]  }
  0x67   :  { %215 = vmatprep.subr.bf16.mxu0 %v3911_v7  ;;  %v3961_v32 = vld [vmem:[#allocation7 + $0xa0] ss:$16 sps:$4 sm:$0xff]   ;;  %v3962_v33 = vld [vmem:[#allocation7 + $0xc4] ss:$16 sps:$4 sm:$0xff]   ;;  %v3934_v34 = vld [vmem:[#allocation7 + $0x28] ss:$16 sps:$4 sm:$0xff]  }
  0x68   :  { %v3942_v35 = vld [vmem:[#allocation7 + $0x4c] ss:$16 sps:$4 sm:$0xff]   ;;  %v3967_v36 = vld [vmem:[#allocation7 + $0xc0] ss:$16 sps:$4 sm:$0xff]   ;;  %v3968_v37 = vld [vmem:[#allocation7 + $0xe4] ss:$16 sps:$4 sm:$0xff]  }
  0x69   :  { %665 = vmatpush1.bf16.msra.mxu1 %v3943_v19  ;;  %v3940_v38 = vld [vmem:[#allocation7 + $0x48] ss:$16 sps:$4 sm:$0xff]   ;;  %v3948_v39 = vld [vmem:[#allocation7 + $0x6c] ss:$16 sps:$4 sm:$0xff]   ;;  %v3973_v40 = vld [vmem:[#allocation7 + $0xe0] ss:$16 sps:$4 sm:$0xff]  }
  0x6a   :  { %216 = vmatpush1.bf16.msra.mxu0 %v3913_v8  ;;  %666 = vmatprep.subr.bf16.mxu1 %v3944_v20  ;;  %v3974_v41 = vld [vmem:[#allocation7 + $0x104] ss:$16 sps:$4 sm:$0xff]   ;;  %v3946_v42 = vld [vmem:[#allocation7 + $0x68] ss:$16 sps:$4 sm:$0xff]   ;;  %v3954_v43 = vld [vmem:[#allocation7 + $0x8c] ss:$16 sps:$4 sm:$0xff]  }
  0x6b   :  { %217 = vmatprep.subr.bf16.mxu0 %v3914_v10  ;;  %v3979_v44 = vld [vmem:[#allocation7 + $0x100] ss:$16 sps:$4 sm:$0xff]   ;;  %v3980_v45 = vld [vmem:[#allocation7 + $0x124] ss:$16 sps:$4 sm:$0xff]   ;;  %v3952_v46 = vld [vmem:[#allocation7 + $0x88] ss:$16 sps:$4 sm:$0xff]  }
  0x6c   :  { %v3985_v47 = vld [vmem:[#allocation7 + $0x120] ss:$16 sps:$4 sm:$0xff]   ;;  %v3960_v48 = vld [vmem:[#allocation7 + $0xac] ss:$16 sps:$4 sm:$0xff]   ;;  %v3986_v49 = vld [vmem:[#allocation7 + $0x144] ss:$16 sps:$4 sm:$0xff]  }
  0x6d   :  { %667 = vmatpush1.bf16.msra.mxu1 %v3949_v23  ;;  %v3958_v50 = vld [vmem:[#allocation7 + $0xa8] ss:$16 sps:$4 sm:$0xff]   ;;  %v3991_v51 = vld [vmem:[#allocation7 + $0x140] ss:$16 sps:$4 sm:$0xff]   ;;  %v3966_v52 = vld [vmem:[#allocation7 + $0xcc] ss:$16 sps:$4 sm:$0xff]  }
  0x6e   :  { %218 = vmatpush1.bf16.msra.mxu0 %v3916_v13  ;;  %668 = vmatprep.subr.bf16.mxu1 %v3950_v24  ;;  %v3992_v53 = vld [vmem:[#allocation7 + $0x164] ss:$16 sps:$4 sm:$0xff]   ;;  %v3964_v54 = vld [vmem:[#allocation7 + $0xc8] ss:$16 sps:$4 sm:$0xff]   ;;  %v3997_v55 = vld [vmem:[#allocation7 + $0x160] ss:$16 sps:$4 sm:$0xff]  }
  0x6f   :  { %219 = vmatprep.subr.bf16.mxu0 %v3917_v14  ;;  %v3972_v56 = vld [vmem:[#allocation7 + $0xec] ss:$16 sps:$4 sm:$0xff]   ;;  %v3998_v57 = vld [vmem:[#allocation7 + $0x184] ss:$16 sps:$4 sm:$0xff]   ;;  %v3970_v58 = vld [vmem:[#allocation7 + $0xe8] ss:$16 sps:$4 sm:$0xff]  }
  0x70   :  { %v4003_v59 = vld [vmem:[#allocation7 + $0x180] ss:$16 sps:$4 sm:$0xff]   ;;  %v3978_v60 = vld [vmem:[#allocation7 + $0x10c] ss:$16 sps:$4 sm:$0xff]   ;;  %v4004_v61 = vld [vmem:[#allocation7 + $0x1a4] ss:$16 sps:$4 sm:$0xff]  }
  0x71   :  { %669 = vmatpush1.bf16.msra.mxu1 %v3955_v27  ;;  %v3976_v62 = vld [vmem:[#allocation7 + $0x108] ss:$16 sps:$4 sm:$0xff]   ;;  %v4009_v63 = vld [vmem:[#allocation7 + $0x1a0] ss:$16 sps:$4 sm:$0xff]   ;;  %v3984_v0 = vld [vmem:[#allocation7 + $0x12c] ss:$16 sps:$4 sm:$0xff]  }
  0x72   :  { %220 = vmatpush1.bf16.msra.mxu0 %v3919_v17  ;;  %670 = vmatprep.subr.bf16.mxu1 %v3956_v28  ;;  %v3982_v1 = vld [vmem:[#allocation7 + $0x128] ss:$16 sps:$4 sm:$0xff]   ;;  %v3990_v2 = vld [vmem:[#allocation7 + $0x14c] ss:$16 sps:$4 sm:$0xff]   ;;  %v4010_v10 = vld [vmem:[#allocation7 + $0x1c4] ss:$16 sps:$4 sm:$0xff]  }
  0x73   :  { %221 = vmatprep.subr.bf16.mxu0 %v3920_v18  ;;  %v3988_v3 = vld [vmem:[#allocation7 + $0x148] ss:$16 sps:$4 sm:$0xff]   ;;  %v3996_v4 = vld [vmem:[#allocation7 + $0x16c] ss:$16 sps:$4 sm:$0xff]   ;;  %v4015_v13 = vld [vmem:[#allocation7 + $0x1c0] ss:$16 sps:$4 sm:$0xff]  }
  0x74   :  { %v3994_v5 = vld [vmem:[#allocation7 + $0x168] ss:$16 sps:$4 sm:$0xff]   ;;  %v4002_v6 = vld [vmem:[#allocation7 + $0x18c] ss:$16 sps:$4 sm:$0xff]   ;;  %v4016_v14 = vld [vmem:[#allocation7 + $0x1e4] ss:$16 sps:$4 sm:$0xff]  }
  0x75   :  { %671 = vmatpush1.bf16.msra.mxu1 %v3961_v32  ;;  %v4000_v7 = vld [vmem:[#allocation7 + $0x188] ss:$16 sps:$4 sm:$0xff]   ;;  %v4008_v8 = vld [vmem:[#allocation7 + $0x1ac] ss:$16 sps:$4 sm:$0xff]   ;;  %v4021_v17 = vld [vmem:[#allocation7 + $0x1e0] ss:$16 sps:$4 sm:$0xff]  }
  0x76   :  { %222 = vmatpush1.bf16.msra.mxu0 %v3922_v21  ;;  %672 = vmatprep.subr.bf16.mxu1 %v3962_v33  ;;  %v4006_v9 = vld [vmem:[#allocation7 + $0x1a8] ss:$16 sps:$4 sm:$0xff]   ;;  %v4014_v11 = vld [vmem:[#allocation7 + $0x1cc] ss:$16 sps:$4 sm:$0xff]   ;;  %v750_v18 = vld [vmem:[#allocation8] sm:$0xff] }
  0x77   :  { %223 = vmatprep.subr.bf16.mxu0 %v3923_v22  ;;  %v4012_v12 = vld [vmem:[#allocation7 + $0x1c8] ss:$16 sps:$4 sm:$0xff]   ;;  %v4020_v15 = vld [vmem:[#allocation7 + $0x1ec] ss:$16 sps:$4 sm:$0xff]   ;;  %v754_v19 = vld [vmem:[#allocation8 + $0x20] sm:$0xff] }
  0x78   :  { %v4018_v16 = vld [vmem:[#allocation7 + $0x1e8] ss:$16 sps:$4 sm:$0xff]   ;;  %v3454_v21 = vcombine.low %v750_v18, %v754_v19  ;;  %v3455_v22 = vcombine.high %v750_v18, %v754_v19  ;;  %v802_v18 = vld [vmem:[#allocation8 + $0x1a0] sm:$0xff] }
  0x79   :  { %673 = vmatpush1.bf16.msra.mxu1 %v3967_v36  ;;  %v751_v20 = vld [vmem:[#allocation8 + $0x8] sm:$0xff] }
  0x7a   :  { %224 = vmatpush1.bf16.msra.mxu0 %v3925_v25  ;;  %674 = vmatprep.subr.bf16.mxu1 %v3968_v37  ;;  %v755_v23 = vld [vmem:[#allocation8 + $0x28] sm:$0xff] }
  0x7b   :  { %701 = vmatprep.subr.bf16.mxu0 %v3930_v26  ;;  %v3456_v24 = vcombine.low %v751_v20, %v755_v23  ;;  %v3457_v25 = vcombine.high %v751_v20, %v755_v23  ;;  %v119_v26 = vlaneseq  ;;  %v799_v19 = vld [vmem:[#allocation8 + $0x188] sm:$0xff] }
  0x7c   :  { %v803_v20 = vld [vmem:[#allocation8 + $0x1a8] sm:$0xff] }
  0x7d   :  { %242 = vmatmul.mubr.bf16.vlgmr.msra.gmra.mrb[0].mxu0 %v100_v29  ;;  %675 = vmatpush1.bf16.msra.mxu1 %v3973_v40  ;;  %v4362_v27 = vshrl.u32 %v119_v26, 7  ;;  %v117_v29 = vld [vmem:[%s4459_s2] sm:$0x3]  ;;  %v758_v40 = vld [vmem:[#allocation8 + $0x40] sm:$0xff] }
  0x7e   :  { %702 = vmatpush1.bf16.msra.mxu0 %v3928_v30  ;;  %676 = vmatprep.subr.bf16.mxu1 %v3974_v41  ;;  %v810_v26 = vld [vmem:[#allocation8 + $0x1e0] sm:$0xff] }
  0x7f   :  { %703 = vmatprep.subr.bf16.mxu0 %v3936_v31  ;;  %v4365_v28 = vsub.s32 0, %v4362_v27  ;;  %v4371_v30 = vsub.s32 1, %v4362_v27 }
  0x81   :  { %677 = vmatpush1.bf16.msra.mxu1 %v3979_v44  ;;  %v122_v31 = vrot.slane %v117_v29, %v4365_v28  ;;  %v126_v32 = vrot.slane %v117_v29, %v4371_v30  ;;  %v763_v44 = vld [vmem:[#allocation8 + $0x68] sm:$0xff] }
  0x82   :  { %704 = vmatpush1.bf16.msra.mxu0 %v3934_v34  ;;  %678 = vmatprep.subr.bf16.mxu1 %v3980_v45  ;;  %v807_v29 = vld [vmem:[#allocation8 + $0x1c8] sm:$0xff] }
  0x83   :  { %705 = vmatprep.subr.bf16.mxu0 %v3942_v35 }
  0x85   :  { %679 = vmatpush1.bf16.msra.mxu1 %v3985_v47 }
  0x86   :  { %706 = vmatpush1.bf16.msra.mxu0 %v3940_v38  ;;  %680 = vmatprep.subr.bf16.mxu1 %v3986_v49  ;;  %v766_v49 = vld [vmem:[#allocation8 + $0x80] sm:$0xff] }
  0x87   :  { %707 = vmatprep.subr.bf16.mxu0 %v3948_v39 }
  0x89   :  { %681 = vmatpush1.bf16.msra.mxu1 %v3991_v51  ;;  %v767_v51 = vld [vmem:[#allocation8 + $0x88] sm:$0xff] }
  0x8a   :  { %708 = vmatpush1.bf16.msra.mxu0 %v3946_v42  ;;  %682 = vmatprep.subr.bf16.mxu1 %v3992_v53  ;;  %v762_v42 = vld [vmem:[#allocation8 + $0x60] sm:$0xff] }
  0x8b   :  { %709 = vmatprep.subr.bf16.mxu0 %v3954_v43  ;;  %v759_v43 = vld [vmem:[#allocation8 + $0x48] sm:$0xff]  ;;  %v3463_v47 = vcombine.high %v758_v40, %v762_v42  ;;  %v3462_v53 = vcombine.low %v758_v40, %v762_v42 }
  0x8d   :  { %683 = vmatpush1.bf16.msra.mxu1 %v3997_v55 }
  0x8e   :  { %710 = vmatpush1.bf16.msra.mxu0 %v3952_v46  ;;  %684 = vmatprep.subr.bf16.mxu1 %v3998_v57  ;;  %v774_v57 = vld [vmem:[#allocation8 + $0xc0] sm:$0xff] }
  0x8f   :  { %711 = vmatprep.subr.bf16.mxu0 %v3960_v48  ;;  %v3465_v48 = vcombine.high %v759_v43, %v763_v44 }
  0x91   :  { %685 = vmatpush1.bf16.msra.mxu1 %v4003_v59  ;;  %v775_v59 = vld [vmem:[#allocation8 + $0xc8] sm:$0xff] }
  0x92   :  { %712 = vmatpush1.bf16.msra.mxu0 %v3958_v50  ;;  %686 = vmatprep.subr.bf16.mxu1 %v4004_v61  ;;  %v770_v50 = vld [vmem:[#allocation8 + $0xa0] sm:$0xff] }
  0x93   :  { %713 = vmatprep.subr.bf16.mxu0 %v3966_v52  ;;  %v771_v52 = vld [vmem:[#allocation8 + $0xa8] sm:$0xff]  ;;  %v3471_v55 = vcombine.high %v766_v49, %v770_v50  ;;  %v3470_v61 = vcombine.low %v766_v49, %v770_v50 }
  0x95   :  { %687 = vmatpush1.bf16.msra.mxu1 %v4009_v63 }
  0x96   :  { %714 = vmatpush1.bf16.msra.mxu0 %v3964_v54  ;;  %688 = vmatprep.subr.bf16.mxu1 %v4010_v10  ;;  %v3464_v54 = vcombine.low %v759_v43, %v763_v44  ;;  %v794_v10 = vld [vmem:[#allocation8 + $0x160] sm:$0xff] }
  0x97   :  { %715 = vmatprep.subr.bf16.mxu0 %v3972_v56  ;;  %v3473_v56 = vcombine.high %v767_v51, %v771_v52  ;;  %v822_v44 = vld [vmem:[#allocation8 + $0x240] sm:$0xff] }
  0x99   :  { %689 = vmatpush1.bf16.msra.mxu1 %v4015_v13 }
  0x9a   :  { %716 = vmatpush1.bf16.msra.mxu0 %v3970_v58  ;;  %690 = vmatprep.subr.bf16.mxu1 %v4016_v14  ;;  %v778_v58 = vld [vmem:[#allocation8 + $0xe0] sm:$0xff] }
  0x9b   :  { %717 = vmatprep.subr.bf16.mxu0 %v3978_v60  ;;  %v779_v60 = vld [vmem:[#allocation8 + $0xe8] sm:$0xff]  ;;  %v3479_v63 = vcombine.high %v774_v57, %v778_v58 }
  0x9d   :  { %691 = vmatpush1.bf16.msra.mxu1 %v4021_v17  ;;  %v798_v17 = vld [vmem:[#allocation8 + $0x180] sm:$0xff] }
  0x9e   :  { %718 = vmatpush1.bf16.msra.mxu0 %v3976_v62  ;;  %2328 = vmatprep.subr.bf16.mxu1 %v3455_v22  ;;  %v3472_v62 = vcombine.low %v767_v51, %v771_v52  ;;  %v3503_v23 = vcombine.high %v798_v17, %v802_v18  ;;  %v830_v52 = vld [vmem:[#allocation8 + $0x280] sm:$0xff] }
  0x9f   :  { %719 = vmatprep.subr.bf16.mxu0 %v3984_v0  ;;  %v3481_v0 = vcombine.high %v775_v59, %v779_v60 }
  0xa2   :  { %720 = vmatpush1.bf16.msra.mxu0 %v3982_v1  ;;  %v782_v1 = vld [vmem:[#allocation8 + $0x100] sm:$0xff] }
  0xa3   :  { %721 = vmatprep.subr.bf16.mxu0 %v3990_v2  ;;  %v786_v2 = vld [vmem:[#allocation8 + $0x120] sm:$0xff] }
  0xa4   :  { %v3486_v13 = vcombine.low %v782_v1, %v786_v2 }
  0xa6   :  { %722 = vmatpush1.bf16.msra.mxu0 %v3988_v3  ;;  %v783_v3 = vld [vmem:[#allocation8 + $0x108] sm:$0xff] }
  0xa7   :  { %723 = vmatprep.subr.bf16.mxu0 %v3996_v4  ;;  %v787_v4 = vld [vmem:[#allocation8 + $0x128] sm:$0xff] }
  0xa8   :  { %v3488_v14 = vcombine.low %v783_v3, %v787_v4 }
  0xaa   :  { %724 = vmatpush1.bf16.msra.mxu0 %v3994_v5  ;;  %v3478_v5 = vcombine.low %v774_v57, %v778_v58 }
  0xab   :  { %725 = vmatprep.subr.bf16.mxu0 %v4002_v6  ;;  %v3480_v6 = vcombine.low %v775_v59, %v779_v60  ;;  %v838_v60 = vld [vmem:[#allocation8 + $0x2c0] sm:$0xff] }
  0xae   :  { %726 = vmatpush1.bf16.msra.mxu0 %v4000_v7  ;;  %v3487_v7 = vcombine.high %v782_v1, %v786_v2 }
  0xaf   :  { %727 = vmatprep.subr.bf16.mxu0 %v4008_v8  ;;  %v3489_v8 = vcombine.high %v783_v3, %v787_v4  ;;  %v846_v4 = vld [vmem:[#allocation8 + $0x300] sm:$0xff] }
  0xb2   :  { %728 = vmatpush1.bf16.msra.mxu0 %v4006_v9  ;;  %v790_v9 = vld [vmem:[#allocation8 + $0x140] sm:$0xff] }
  0xb3   :  { %729 = vmatprep.subr.bf16.mxu0 %v4014_v11  ;;  %v791_v11 = vld [vmem:[#allocation8 + $0x148] sm:$0xff] }
  0xb6   :  { %730 = vmatpush1.bf16.msra.mxu0 %v4012_v12  ;;  %v795_v12 = vld [vmem:[#allocation8 + $0x168] sm:$0xff] }
  0xb7   :  { %731 = vmatprep.subr.bf16.mxu0 %v4020_v15  ;;  %v3495_v15 = vcombine.high %v790_v9, %v794_v10  ;;  %v3496_v22 = vcombine.low %v791_v11, %v795_v12 }
  0xba   :  { %732 = vmatpush1.bf16.msra.mxu0 %v4018_v16  ;;  %v3497_v16 = vcombine.high %v791_v11, %v795_v12  ;;  %v854_v12 = vld [vmem:[#allocation8 + $0x340] sm:$0xff] }
  0xbb   :  { %2410 = vmatprep.subr.bf16.mxu0 %v3457_v25  ;;  %v806_v25 = vld [vmem:[#allocation8 + $0x1c0] sm:$0xff] }
  0xbc   :  { %v3510_v40 = vcombine.low %v806_v25, %v810_v26 }
 0x150   :  { %v243_v33 = vpop.f32.mrb[0].mxu0 }
 0x151   :  { %v244_v34 = vadd.f32 %v243_v33, %v122_v31  ;;  %v245_v35 = vpop.f32.mrb[1].mxu0  ;;  %v811_v31 = vld [vmem:[#allocation8 + $0x1e8] sm:$0xff]  ;;  %v3504_v33 = vcombine.low %v799_v19, %v803_v20 }
 0x152   :  { %v246_v36 = vadd.f32 %v245_v35, %v126_v32  ;;  %v247_v37 = vpop.f32.mrb[2].mxu0  ;;  %v3502_v32 = vcombine.low %v798_v17, %v802_v18  ;;  %v3513_v35 = vcombine.high %v807_v29, %v811_v31 }
 0x153   :  { %v250_v38 = vmax.f32 %v244_v34, 0.0  ;;  %v248_v39 = vpop.f32.mrb[3].mxu0  ;;  %v3511_v34 = vcombine.high %v806_v25, %v810_v26  ;;  %v818_v37 = vld [vmem:[#allocation8 + $0x220] sm:$0xff]  ;;  %v867_v26 = vld [vmem:[#allocation8 + $0x3a8] sm:$0xff] }
 0x154   :  { %v251_v41 = vmax.f32 %v246_v36, 0.0  ;;  %v814_v36 = vld [vmem:[#allocation8 + $0x200] sm:$0xff]  ;;  %v819_v39 = vld [vmem:[#allocation8 + $0x228] sm:$0xff] }
 0x155   :  { %v252_v46 = vpack.c.bf16 %v250_v38, %v250_v38  ;;  %v815_v38 = vld [vmem:[#allocation8 + $0x208] sm:$0xff]  ;;  %v3519_v42 = vcombine.high %v814_v36, %v818_v37 }
 0x156   :  { %v253_v45 = vpack.c.bf16 %v251_v41, %v251_v41  ;;  %v3512_v41 = vcombine.low %v807_v29, %v811_v31  ;;  %v3521_v43 = vcombine.high %v815_v38, %v819_v39  ;;  %v3520_v49 = vcombine.low %v815_v38, %v819_v39 }
 0x158   :  { %692 = vmatprep.mubr.bf16.mxu1 %v253_v45  ;;  %733 = vmatprep.mubr.bf16.mxu0 %v253_v45  ;;  %v826_v45 = vld [vmem:[#allocation8 + $0x260] sm:$0xff] }
 0x159   :  { %693 = vmatmul.mubr.bf16.vlgmr.msra.gmra.mrb[0].mxu1 %v252_v46  ;;  %734 = vmatmul.mubr.bf16.vlgmr.msra.gmra.mrb[4].mxu0 %v252_v46  ;;  %v823_v46 = vld [vmem:[#allocation8 + $0x248] sm:$0xff]  ;;  %v3527_v50 = vcombine.high %v822_v44, %v826_v45 }
 0x15a   :  { %2329 = vmatpush1.bf16.msra.mxu1 %v3454_v21  ;;  %2411 = vmatpush1.bf16.msra.mxu0 %v3456_v24  ;;  %v3494_v21 = vcombine.low %v790_v9, %v794_v10  ;;  %v3505_v24 = vcombine.high %v799_v19, %v803_v20 }
 0x15b   :  { %2330 = vmatprep.subr.bf16.mxu1 %v3463_v47  ;;  %2412 = vmatprep.subr.bf16.mxu0 %v3465_v48  ;;  %v827_v47 = vld [vmem:[#allocation8 + $0x268] sm:$0xff]  ;;  %v3518_v48 = vcombine.low %v814_v36, %v818_v37 }
 0x15c   :  { %v3529_v51 = vcombine.high %v823_v46, %v827_v47  ;;  %v3528_v57 = vcombine.low %v823_v46, %v827_v47  ;;  %v875_v37 = vld [vmem:[#allocation8 + $0x3e8] sm:$0xff] }
 0x15e   :  { %2331 = vmatpush1.bf16.msra.mxu1 %v3462_v53  ;;  %2413 = vmatpush1.bf16.msra.mxu0 %v3464_v54  ;;  %v834_v53 = vld [vmem:[#allocation8 + $0x2a0] sm:$0xff]  ;;  %v831_v54 = vld [vmem:[#allocation8 + $0x288] sm:$0xff] }
 0x15f   :  { %2332 = vmatprep.subr.bf16.mxu1 %v3471_v55  ;;  %2414 = vmatprep.subr.bf16.mxu0 %v3473_v56  ;;  %v835_v55 = vld [vmem:[#allocation8 + $0x2a8] sm:$0xff]  ;;  %v3526_v56 = vcombine.low %v822_v44, %v826_v45  ;;  %v3535_v58 = vcombine.high %v830_v52, %v834_v53 }
 0x160   :  { %v3537_v59 = vcombine.high %v831_v54, %v835_v55  ;;  %v3536_v1 = vcombine.low %v831_v54, %v835_v55  ;;  %v883_v45 = vld [vmem:[#allocation8 + $0x428] sm:$0xff] }
 0x162   :  { %2333 = vmatpush1.bf16.msra.mxu1 %v3470_v61  ;;  %2415 = vmatpush1.bf16.msra.mxu0 %v3472_v62  ;;  %v842_v61 = vld [vmem:[#allocation8 + $0x2e0] sm:$0xff]  ;;  %v839_v62 = vld [vmem:[#allocation8 + $0x2c8] sm:$0xff] }
 0x163   :  { %2334 = vmatprep.subr.bf16.mxu1 %v3479_v63  ;;  %2416 = vmatprep.subr.bf16.mxu0 %v3481_v0  ;;  %v843_v63 = vld [vmem:[#allocation8 + $0x2e8] sm:$0xff]  ;;  %v3534_v0 = vcombine.low %v830_v52, %v834_v53  ;;  %v3543_v2 = vcombine.high %v838_v60, %v842_v61 }
 0x164   :  { %v3545_v3 = vcombine.high %v839_v62, %v843_v63  ;;  %v3544_v9 = vcombine.low %v839_v62, %v843_v63 }
 0x166   :  { %2335 = vmatpush1.bf16.msra.mxu1 %v3478_v5  ;;  %2417 = vmatpush1.bf16.msra.mxu0 %v3480_v6  ;;  %v850_v5 = vld [vmem:[#allocation8 + $0x320] sm:$0xff]  ;;  %v847_v6 = vld [vmem:[#allocation8 + $0x308] sm:$0xff] }
 0x167   :  { %2336 = vmatprep.subr.bf16.mxu1 %v3487_v7  ;;  %2418 = vmatprep.subr.bf16.mxu0 %v3489_v8  ;;  %v851_v7 = vld [vmem:[#allocation8 + $0x328] sm:$0xff]  ;;  %v3542_v8 = vcombine.low %v838_v60, %v842_v61  ;;  %v3551_v10 = vcombine.high %v846_v4, %v850_v5 }
 0x168   :  { %v3553_v11 = vcombine.high %v847_v6, %v851_v7  ;;  %v3552_v17 = vcombine.low %v847_v6, %v851_v7  ;;  %v887_v6 = vld [vmem:[#allocation8 + $0x448] sm:$0xff] }
 0x169   :  { %v891_v7 = vld [vmem:[#allocation8 + $0x468] sm:$0xff] }
 0x16a   :  { %2337 = vmatpush1.bf16.msra.mxu1 %v3486_v13  ;;  %2419 = vmatpush1.bf16.msra.mxu0 %v3488_v14  ;;  %v858_v13 = vld [vmem:[#allocation8 + $0x360] sm:$0xff]  ;;  %v855_v14 = vld [vmem:[#allocation8 + $0x348] sm:$0xff] }
 0x16b   :  { %2338 = vmatprep.subr.bf16.mxu1 %v3495_v15  ;;  %2420 = vmatprep.subr.bf16.mxu0 %v3497_v16  ;;  %v859_v15 = vld [vmem:[#allocation8 + $0x368] sm:$0xff]  ;;  %v3550_v16 = vcombine.low %v846_v4, %v850_v5  ;;  %v3559_v18 = vcombine.high %v854_v12, %v858_v13  ;;  %v3558_v20 = vcombine.low %v854_v12, %v858_v13  ;;  %v890_v5 = vld [vmem:[#allocation8 + $0x460] sm:$0xff] }
 0x16c   :  { %v3561_v19 = vcombine.high %v855_v14, %v859_v15  ;;  %v3593_v12 = vcombine.high %v887_v6, %v891_v7  ;;  %v898_v13 = vld [vmem:[#allocation8 + $0x4a0] sm:$0xff] }
 0x16e   :  { %2339 = vmatpush1.bf16.msra.mxu1 %v3494_v21  ;;  %2421 = vmatpush1.bf16.msra.mxu0 %v3496_v22  ;;  %v3560_v21 = vcombine.low %v855_v14, %v859_v15  ;;  %v862_v22 = vld [vmem:[#allocation8 + $0x380] sm:$0xff]  ;;  %v895_v14 = vld [vmem:[#allocation8 + $0x488] sm:$0xff] }
 0x16f   :  { %2340 = vmatprep.subr.bf16.mxu1 %v3503_v23  ;;  %2422 = vmatprep.subr.bf16.mxu0 %v3505_v24  ;;  %v866_v23 = vld [vmem:[#allocation8 + $0x3a0] sm:$0xff]  ;;  %v863_v24 = vld [vmem:[#allocation8 + $0x388] sm:$0xff] }
 0x170   :  { %v3567_v25 = vcombine.high %v862_v22, %v866_v23  ;;  %v3566_v29 = vcombine.low %v862_v22, %v866_v23  ;;  %v3568_v31 = vcombine.low %v863_v24, %v867_v26  ;;  %v899_v15 = vld [vmem:[#allocation8 + $0x4a8] sm:$0xff]  ;;  %v906_v22 = vld [vmem:[#allocation8 + $0x4e0] sm:$0xff] }
 0x171   :  { %v903_v23 = vld [vmem:[#allocation8 + $0x4c8] sm:$0xff] }
 0x172   :  { %2341 = vmatpush1.bf16.msra.mxu1 %v3502_v32  ;;  %2423 = vmatpush1.bf16.msra.mxu0 %v3504_v33  ;;  %v3569_v32 = vcombine.high %v863_v24, %v867_v26  ;;  %v870_v33 = vld [vmem:[#allocation8 + $0x3c0] sm:$0xff]  ;;  %v907_v24 = vld [vmem:[#allocation8 + $0x4e8] sm:$0xff]  ;;  %v3600_v26 = vcombine.low %v895_v14, %v899_v15 }
 0x173   :  { %2342 = vmatprep.subr.bf16.mxu1 %v3511_v34  ;;  %2424 = vmatprep.subr.bf16.mxu0 %v3513_v35  ;;  %v874_v34 = vld [vmem:[#allocation8 + $0x3e0] sm:$0xff]  ;;  %v871_v35 = vld [vmem:[#allocation8 + $0x3c8] sm:$0xff] }
 0x174   :  { %v3575_v36 = vcombine.high %v870_v33, %v874_v34  ;;  %v3574_v38 = vcombine.low %v870_v33, %v874_v34  ;;  %v3576_v39 = vcombine.low %v871_v35, %v875_v37  ;;  %v914_v33 = vld [vmem:[#allocation8 + $0x520] sm:$0xff]  ;;  %v911_v34 = vld [vmem:[#allocation8 + $0x508] sm:$0xff] }
 0x176   :  { %2343 = vmatpush1.bf16.msra.mxu1 %v3510_v40  ;;  %2425 = vmatpush1.bf16.msra.mxu0 %v3512_v41  ;;  %v3577_v40 = vcombine.high %v871_v35, %v875_v37  ;;  %v878_v41 = vld [vmem:[#allocation8 + $0x400] sm:$0xff]  ;;  %v915_v35 = vld [vmem:[#allocation8 + $0x528] sm:$0xff]  ;;  %v3608_v37 = vcombine.low %v903_v23, %v907_v24 }
 0x177   :  { %2344 = vmatprep.subr.bf16.mxu1 %v3519_v42  ;;  %2426 = vmatprep.subr.bf16.mxu0 %v3521_v43  ;;  %v882_v42 = vld [vmem:[#allocation8 + $0x420] sm:$0xff]  ;;  %v879_v43 = vld [vmem:[#allocation8 + $0x408] sm:$0xff] }
 0x178   :  { %v3583_v44 = vcombine.high %v878_v41, %v882_v42  ;;  %v3582_v46 = vcombine.low %v878_v41, %v882_v42  ;;  %v3584_v47 = vcombine.low %v879_v43, %v883_v45  ;;  %v922_v41 = vld [vmem:[#allocation8 + $0x560] sm:$0xff]  ;;  %v919_v42 = vld [vmem:[#allocation8 + $0x548] sm:$0xff] }
 0x17a   :  { %2345 = vmatpush1.bf16.msra.mxu1 %v3518_v48  ;;  %2427 = vmatpush1.bf16.msra.mxu0 %v3520_v49  ;;  %v3585_v48 = vcombine.high %v879_v43, %v883_v45  ;;  %v4378_v49 = vld [vmem:[%s4461_s4] sm:$0xf]  ;;  %v923_v43 = vld [vmem:[#allocation8 + $0x568] sm:$0xff]  ;;  %v3616_v45 = vcombine.low %v911_v34, %v915_v35 }
 0x17b   :  { %2346 = vmatprep.subr.bf16.mxu1 %v3527_v50  ;;  %2428 = vmatprep.subr.bf16.mxu0 %v3529_v51  ;;  %v334_v50 = vsub.s32 3, %v4362_v27  ;;  %v323_v51 = vrot.slane %v4378_v49, %v4365_v28  ;;  %v327_v52 = vrot.slane %v4378_v49, %v4371_v30 }
 0x17d   :  { %v335_v53 = vrot.slane %v4378_v49, %v334_v50 }
 0x17e   :  { %2347 = vmatpush1.bf16.msra.mxu1 %v3526_v56  ;;  %2429 = vmatpush1.bf16.msra.mxu0 %v3528_v57 }
 0x17f   :  { %2348 = vmatprep.subr.bf16.mxu1 %v3535_v58  ;;  %2430 = vmatprep.subr.bf16.mxu0 %v3537_v59 }
 0x182   :  { %2349 = vmatpush1.bf16.msra.mxu1 %v3534_v0  ;;  %2431 = vmatpush1.bf16.msra.mxu0 %v3536_v1 }
 0x183   :  { %2350 = vmatprep.subr.bf16.mxu1 %v3543_v2  ;;  %2432 = vmatprep.subr.bf16.mxu0 %v3545_v3  ;;  %v886_v3 = vld [vmem:[#allocation8 + $0x440] sm:$0xff] }
 0x186   :  { %2351 = vmatpush1.bf16.msra.mxu1 %v3542_v8  ;;  %2433 = vmatpush1.bf16.msra.mxu0 %v3544_v9 }
 0x187   :  { %2352 = vmatprep.subr.bf16.mxu1 %v3551_v10  ;;  %2434 = vmatprep.subr.bf16.mxu0 %v3553_v11  ;;  %v894_v10 = vld [vmem:[#allocation8 + $0x480] sm:$0xff]  ;;  %v3591_v11 = vcombine.high %v886_v3, %v890_v5 }
 0x18a   :  { %2353 = vmatpush1.bf16.msra.mxu1 %v3550_v16  ;;  %2435 = vmatpush1.bf16.msra.mxu0 %v3552_v17  ;;  %v3590_v17 = vcombine.low %v886_v3, %v890_v5  ;;  %v942_v3 = vld [vmem:[#allocation8 + $0x600] sm:$0xff]  ;;  %v943_v5 = vld [vmem:[#allocation8 + $0x608] sm:$0xff] }
 0x18b   :  { %2354 = vmatprep.subr.bf16.mxu1 %v3559_v18  ;;  %2436 = vmatprep.subr.bf16.mxu0 %v3561_v19  ;;  %v3592_v18 = vcombine.low %v887_v6, %v891_v7  ;;  %v3599_v19 = vcombine.high %v894_v10, %v898_v13  ;;  %v947_v6 = vld [vmem:[#allocation8 + $0x628] sm:$0xff] }
 0x18e   :  { %2355 = vmatpush1.bf16.msra.mxu1 %v3558_v20  ;;  %2437 = vmatpush1.bf16.msra.mxu0 %v3560_v21  ;;  %v3601_v20 = vcombine.high %v895_v14, %v899_v15  ;;  %v902_v21 = vld [vmem:[#allocation8 + $0x4c0] sm:$0xff]  ;;  %v951_v15 = vld [vmem:[#allocation8 + $0x648] sm:$0xff] }
 0x18f   :  { %2356 = vmatprep.subr.bf16.mxu1 %v3567_v25  ;;  %2438 = vmatprep.subr.bf16.mxu0 %v3569_v32  ;;  %v3598_v25 = vcombine.low %v894_v10, %v898_v13  ;;  %v910_v32 = vld [vmem:[#allocation8 + $0x500] sm:$0xff] }
 0x190   :  { %v950_v13 = vld [vmem:[#allocation8 + $0x640] sm:$0xff] }
 0x191   :  { %v954_v14 = vld [vmem:[#allocation8 + $0x660] sm:$0xff] }
 0x192   :  { %2357 = vmatpush1.bf16.msra.mxu1 %v3566_v29  ;;  %2439 = vmatpush1.bf16.msra.mxu0 %v3568_v31  ;;  %v3607_v29 = vcombine.high %v902_v21, %v906_v22  ;;  %v3609_v31 = vcombine.high %v903_v23, %v907_v24  ;;  %v962_v23 = vld [vmem:[#allocation8 + $0x6a0] sm:$0xff]  ;;  %v959_v24 = vld [vmem:[#allocation8 + $0x688] sm:$0xff] }
 0x193   :  { %2358 = vmatprep.subr.bf16.mxu1 %v3575_v36  ;;  %2440 = vmatprep.subr.bf16.mxu0 %v3577_v40  ;;  %v3606_v36 = vcombine.low %v902_v21, %v906_v22  ;;  %v918_v40 = vld [vmem:[#allocation8 + $0x540] sm:$0xff] }
 0x194   :  { %v958_v22 = vld [vmem:[#allocation8 + $0x680] sm:$0xff] }
 0x196   :  { %2359 = vmatpush1.bf16.msra.mxu1 %v3574_v38  ;;  %2441 = vmatpush1.bf16.msra.mxu0 %v3576_v39  ;;  %v3615_v38 = vcombine.high %v910_v32, %v914_v33  ;;  %v3617_v39 = vcombine.high %v911_v34, %v915_v35  ;;  %v970_v34 = vld [vmem:[#allocation8 + $0x6e0] sm:$0xff]  ;;  %v967_v35 = vld [vmem:[#allocation8 + $0x6c8] sm:$0xff] }
 0x197   :  { %2369 = vmatprep.subr.bf16.mxu1 %v3583_v44  ;;  %2451 = vmatprep.subr.bf16.mxu0 %v3585_v48  ;;  %v3614_v44 = vcombine.low %v910_v32, %v914_v33  ;;  %v926_v48 = vld [vmem:[#allocation8 + $0x580] sm:$0xff] }
 0x198   :  { %v966_v33 = vld [vmem:[#allocation8 + $0x6c0] sm:$0xff] }
 0x22c   :  { %v694_v54 = vpop.f32.mrb[0].mxu1  ;;  %v4388_v55 = vpop.f32.mrb[4].mxu0 }
 0x22d   :  { %v695_v56 = vadd.f32 %v694_v54, %v323_v51  ;;  %v696_v57 = vpop.f32.mrb[1].mxu1  ;;  %v737_v58 = vpop.f32.mrb[5].mxu0  ;;  %v930_v51 = vld [vmem:[#allocation8 + $0x5a0] sm:$0xff]  ;;  %v3622_v54 = vcombine.low %v918_v40, %v922_v41 }
 0x22e   :  { %v697_v59 = vadd.f32 %v696_v57, %v327_v52  ;;  %v738_v60 = vadd.f32 %v737_v58, %v335_v53  ;;  %v698_v61 = vpop.f32.mrb[2].mxu1  ;;  %v739_v62 = vpop.f32.mrb[6].mxu0  ;;  %v927_v52 = vld [vmem:[#allocation8 + $0x588] sm:$0xff]  ;;  %v3631_v57 = vcombine.high %v926_v48, %v930_v51 }
 0x22f   :  { %v742_v63 = vmax.f32 %v695_v56, 0.0  ;;  %v699_v0 = vpop.f32.mrb[3].mxu1  ;;  %v740_v1 = vpop.f32.mrb[7].mxu0  ;;  %v931_v53 = vld [vmem:[#allocation8 + $0x5a8] sm:$0xff]  ;;  %v3624_v56 = vcombine.low %v919_v42, %v923_v43 }
 0x230   :  { %v743_v2 = vmax.f32 %v697_v59, 0.0  ;;  %v745_v4 = vmax.f32 %v738_v60, 0.0  ;;  %v3633_v58 = vcombine.high %v927_v52, %v931_v53  ;;  %v934_v59 = vld [vmem:[#allocation8 + $0x5c0] sm:$0xff]  ;;  %v935_v61 = vld [vmem:[#allocation8 + $0x5c8] sm:$0xff]  ;;  %v3632_v0 = vcombine.low %v927_v52, %v931_v53 }
 0x231   :  { %v4392_v9 = vpack.c.bf16 %v742_v63, %v742_v63  ;;  %v938_v60 = vld [vmem:[#allocation8 + $0x5e0] sm:$0xff]  ;;  %v939_v62 = vld [vmem:[#allocation8 + $0x5e8] sm:$0xff]  ;;  %v3630_v63 = vcombine.low %v926_v48, %v930_v51 }
 0x232   :  { %v4390_v8 = vpack.c.bf16 %v743_v2, %v743_v2  ;;  %v4396_v16 = vpack.c.bf16 %v745_v4, %v745_v4  ;;  %v3639_v1 = vcombine.high %v934_v59, %v938_v60  ;;  %v3641_v2 = vcombine.high %v935_v61, %v939_v62  ;;  %v946_v4 = vld [vmem:[#allocation8 + $0x620] sm:$0xff]  ;;  %v983_v53 = vld [vmem:[#allocation8 + $0x748] sm:$0xff] }
 0x233   :  { %v3638_v7 = vcombine.low %v934_v59, %v938_v60  ;;  %v3640_v10 = vcombine.low %v935_v61, %v939_v62  ;;  %v982_v51 = vld [vmem:[#allocation8 + $0x740] sm:$0xff] }
 0x234   :  { %2360 = vmatprep.mubr.bf16.mxu1 %v4390_v8  ;;  %2442 = vmatprep.mubr.bf16.mxu0 %v4390_v8  ;;  %v986_v52 = vld [vmem:[#allocation8 + $0x760] sm:$0xff] }
 0x235   :  { %2361 = vmatmul.mubr.bf16.vlgmr.msra.gmra.mrb[4].mxu1 %v4392_v9  ;;  %2443 = vmatmul.mubr.bf16.vlgmr.msra.gmra.mrb[8].mxu0 %v4392_v9  ;;  %v3687_v59 = vcombine.high %v982_v51, %v986_v52  ;;  %v990_v61 = vld [vmem:[#allocation8 + $0x780] sm:$0xff] }
 0x236   :  { %2370 = vmatpush1.bf16.msra.mxu1 %v3582_v46  ;;  %2452 = vmatpush1.bf16.msra.mxu0 %v3584_v47  ;;  %v3623_v46 = vcombine.high %v918_v40, %v922_v41  ;;  %v3625_v47 = vcombine.high %v919_v42, %v923_v43  ;;  %v974_v41 = vld [vmem:[#allocation8 + $0x700] sm:$0xff]  ;;  %v975_v43 = vld [vmem:[#allocation8 + $0x708] sm:$0xff] }
 0x237   :  { %2401 = vmatprep.mubr.bf16.mxu1 %v4396_v16  ;;  %2483 = vmatprep.mubr.bf16.mxu0 %v4396_v16  ;;  %v978_v42 = vld [vmem:[#allocation8 + $0x720] sm:$0xff] }
 0x238   :  { %2371 = vmatprep.subr.bf16.mxu1 %v3591_v11  ;;  %2453 = vmatprep.subr.bf16.mxu0 %v3593_v12  ;;  %v3647_v11 = vcombine.high %v942_v3, %v946_v4  ;;  %v3649_v12 = vcombine.high %v943_v5, %v947_v6  ;;  %v994_v62 = vld [vmem:[#allocation8 + $0x7a0] sm:$0xff] }
 0x23a   :  { %2372 = vmatpush1.bf16.msra.mxu1 %v3590_v17  ;;  %2454 = vmatpush1.bf16.msra.mxu0 %v3592_v18  ;;  %v955_v17 = vld [vmem:[#allocation8 + $0x668] sm:$0xff]  ;;  %v3646_v18 = vcombine.low %v942_v3, %v946_v4  ;;  %v3695_v4 = vcombine.high %v990_v61, %v994_v62 }
 0x23b   :  { %2373 = vmatprep.subr.bf16.mxu1 %v3599_v19  ;;  %2455 = vmatprep.subr.bf16.mxu0 %v3601_v20  ;;  %v3648_v19 = vcombine.low %v943_v5, %v947_v6  ;;  %v3655_v20 = vcombine.high %v950_v13, %v954_v14  ;;  %v3657_v21 = vcombine.high %v951_v15, %v955_v17  ;;  %v998_v6 = vld [vmem:[#allocation8 + $0x7c0] sm:$0xff] }
 0x23e   :  { %2374 = vmatpush1.bf16.msra.mxu1 %v3598_v25  ;;  %2456 = vmatpush1.bf16.msra.mxu0 %v3600_v26  ;;  %v963_v25 = vld [vmem:[#allocation8 + $0x6a8] sm:$0xff]  ;;  %v3654_v26 = vcombine.low %v950_v13, %v954_v14 }
 0x23f   :  { %2375 = vmatprep.subr.bf16.mxu1 %v3607_v29  ;;  %2457 = vmatprep.subr.bf16.mxu0 %v3609_v31  ;;  %v3656_v29 = vcombine.low %v951_v15, %v955_v17  ;;  %v3663_v31 = vcombine.high %v958_v22, %v962_v23  ;;  %v3665_v32 = vcombine.high %v959_v24, %v963_v25 }
 0x242   :  { %2376 = vmatpush1.bf16.msra.mxu1 %v3606_v36  ;;  %2458 = vmatpush1.bf16.msra.mxu0 %v3608_v37  ;;  %v971_v36 = vld [vmem:[#allocation8 + $0x6e8] sm:$0xff]  ;;  %v3662_v37 = vcombine.low %v958_v22, %v962_v23 }
 0x243   :  { %2377 = vmatprep.subr.bf16.mxu1 %v3615_v38  ;;  %2459 = vmatprep.subr.bf16.mxu0 %v3617_v39  ;;  %v3664_v38 = vcombine.low %v959_v24, %v963_v25  ;;  %v3671_v39 = vcombine.high %v966_v33, %v970_v34  ;;  %v3673_v40 = vcombine.high %v967_v35, %v971_v36 }
 0x246   :  { %2378 = vmatpush1.bf16.msra.mxu1 %v3614_v44  ;;  %2460 = vmatpush1.bf16.msra.mxu0 %v3616_v45  ;;  %v979_v44 = vld [vmem:[#allocation8 + $0x728] sm:$0xff]  ;;  %v3670_v45 = vcombine.low %v966_v33, %v970_v34 }
 0x247   :  { %2379 = vmatprep.subr.bf16.mxu1 %v3623_v46  ;;  %2461 = vmatprep.subr.bf16.mxu0 %v3625_v47  ;;  %v3672_v46 = vcombine.low %v967_v35, %v971_v36  ;;  %v3679_v47 = vcombine.high %v974_v41, %v978_v42  ;;  %v3681_v48 = vcombine.high %v975_v43, %v979_v44 }
 0x24a   :  { %2380 = vmatpush1.bf16.msra.mxu1 %v3622_v54  ;;  %2462 = vmatpush1.bf16.msra.mxu0 %v3624_v56  ;;  %v987_v54 = vld [vmem:[#allocation8 + $0x768] sm:$0xff]  ;;  %v3678_v56 = vcombine.low %v974_v41, %v978_v42 }
 0x24b   :  { %2381 = vmatprep.subr.bf16.mxu1 %v3631_v57  ;;  %2463 = vmatprep.subr.bf16.mxu0 %v3633_v58  ;;  %v3680_v57 = vcombine.low %v975_v43, %v979_v44  ;;  %v330_v58 = vsub.s32 2, %v4362_v27  ;;  %v3689_v60 = vcombine.high %v983_v53, %v987_v54 }
 0x24d   :  { %v331_v3 = vrot.slane %v4378_v49, %v330_v58  ;;  %v756_v49 = vld [vmem:[#allocation8 + $0x30] sm:$0xff] }
 0x24e   :  { %2382 = vmatpush1.bf16.msra.mxu1 %v3630_v63  ;;  %2464 = vmatpush1.bf16.msra.mxu0 %v3632_v0  ;;  %v991_v63 = vld [vmem:[#allocation8 + $0x788] sm:$0xff] }
 0x24f   :  { %2383 = vmatprep.subr.bf16.mxu1 %v3639_v1  ;;  %2465 = vmatprep.subr.bf16.mxu0 %v3641_v2  ;;  %v995_v0 = vld [vmem:[#allocation8 + $0x7a8] sm:$0xff]  ;;  %v3686_v1 = vcombine.low %v982_v51, %v986_v52  ;;  %v3688_v2 = vcombine.low %v983_v53, %v987_v54  ;;  %v736_v14 = vadd.f32 %v4388_v55, %v331_v3  ;;  %v761_v55 = vld [vmem:[#allocation8 + $0x58] sm:$0xff] }
 0x250   :  { %v3697_v5 = vcombine.high %v991_v63, %v995_v0  ;;  %v3696_v13 = vcombine.low %v991_v63, %v995_v0  ;;  %v792_v0 = vld [vmem:[#allocation8 + $0x150] sm:$0xff]  ;;  %v797_v3 = vld [vmem:[#allocation8 + $0x178] sm:$0xff] }
 0x251   :  { %v744_v23 = vmax.f32 %v736_v14, 0.0 }
 0x252   :  { %2384 = vmatpush1.bf16.msra.mxu1 %v3638_v7  ;;  %2466 = vmatpush1.bf16.msra.mxu0 %v3640_v10  ;;  %v1002_v7 = vld [vmem:[#allocation8 + $0x7e0] sm:$0xff]  ;;  %v999_v10 = vld [vmem:[#allocation8 + $0x7c8] sm:$0xff] }
 0x253   :  { %2385 = vmatprep.subr.bf16.mxu1 %v3647_v11  ;;  %2467 = vmatprep.subr.bf16.mxu0 %v3649_v12  ;;  %v1003_v11 = vld [vmem:[#allocation8 + $0x7e8] sm:$0xff]  ;;  %v3694_v12 = vcombine.low %v990_v61, %v994_v62  ;;  %v3703_v15 = vcombine.high %v998_v6, %v1002_v7  ;;  %v4407_v33 = vpack.c.bf16 %v744_v23, %v744_v23 }
 0x254   :  { %v3705_v17 = vcombine.high %v999_v10, %v1003_v11  ;;  %v3704_v22 = vcombine.low %v999_v10, %v1003_v11  ;;  %v800_v10 = vld [vmem:[#allocation8 + $0x190] sm:$0xff] }
 0x255   :  { %v804_v11 = vld [vmem:[#allocation8 + $0x1b0] sm:$0xff] }
 0x256   :  { %2386 = vmatpush1.bf16.msra.mxu1 %v3646_v18  ;;  %2468 = vmatpush1.bf16.msra.mxu0 %v3648_v19  ;;  %v752_v18 = vld [vmem:[#allocation8 + $0x10] sm:$0xff]  ;;  %v753_v19 = vld [vmem:[#allocation8 + $0x18] sm:$0xff] }
 0x257   :  { %2387 = vmatprep.subr.bf16.mxu1 %v3655_v20  ;;  %2469 = vmatprep.subr.bf16.mxu0 %v3657_v21  ;;  %v757_v20 = vld [vmem:[#allocation8 + $0x38] sm:$0xff]  ;;  %v3702_v21 = vcombine.low %v998_v6, %v1002_v7  ;;  %v3459_v24 = vcombine.high %v752_v18, %v756_v49 }
 0x258   :  { %v3461_v25 = vcombine.high %v753_v19, %v757_v20  ;;  %v3460_v34 = vcombine.low %v753_v19, %v757_v20  ;;  %v812_v19 = vld [vmem:[#allocation8 + $0x1f0] sm:$0xff]  ;;  %v809_v20 = vld [vmem:[#allocation8 + $0x1d8] sm:$0xff] }
 0x25a   :  { %2388 = vmatpush1.bf16.msra.mxu1 %v3654_v26  ;;  %2470 = vmatpush1.bf16.msra.mxu0 %v3656_v29  ;;  %v760_v26 = vld [vmem:[#allocation8 + $0x50] sm:$0xff] }
 0x25b   :  { %2389 = vmatprep.subr.bf16.mxu1 %v3663_v31  ;;  %2471 = vmatprep.subr.bf16.mxu0 %v3665_v32  ;;  %v764_v29 = vld [vmem:[#allocation8 + $0x70] sm:$0xff]  ;;  %v765_v31 = vld [vmem:[#allocation8 + $0x78] sm:$0xff]  ;;  %v3458_v32 = vcombine.low %v752_v18, %v756_v49 }
 0x25c   :  { %v3467_v35 = vcombine.high %v760_v26, %v764_v29  ;;  %v3469_v36 = vcombine.high %v761_v55, %v765_v31  ;;  %v3466_v41 = vcombine.low %v760_v26, %v764_v29  ;;  %v3468_v42 = vcombine.low %v761_v55, %v765_v31  ;;  %v808_v49 = vld [vmem:[#allocation8 + $0x1d0] sm:$0xff]  ;;  %v817_v55 = vld [vmem:[#allocation8 + $0x218] sm:$0xff] }
 0x25d   :  { %v816_v26 = vld [vmem:[#allocation8 + $0x210] sm:$0xff]  ;;  %v821_v31 = vld [vmem:[#allocation8 + $0x238] sm:$0xff] }
 0x25e   :  { %2390 = vmatpush1.bf16.msra.mxu1 %v3662_v37  ;;  %2472 = vmatpush1.bf16.msra.mxu0 %v3664_v38  ;;  %v768_v37 = vld [vmem:[#allocation8 + $0x90] sm:$0xff] }
 0x25f   :  { %2391 = vmatprep.subr.bf16.mxu1 %v3671_v39  ;;  %2473 = vmatprep.subr.bf16.mxu0 %v3673_v40  ;;  %v772_v38 = vld [vmem:[#allocation8 + $0xb0] sm:$0xff]  ;;  %v769_v39 = vld [vmem:[#allocation8 + $0x98] sm:$0xff] }
 0x260   :  { %v773_v40 = vld [vmem:[#allocation8 + $0xb8] sm:$0xff]  ;;  %v3475_v43 = vcombine.high %v768_v37, %v772_v38  ;;  %v3474_v51 = vcombine.low %v768_v37, %v772_v38  ;;  %v820_v29 = vld [vmem:[#allocation8 + $0x230] sm:$0xff] }
 0x261   :  { %v3477_v44 = vcombine.high %v769_v39, %v773_v40  ;;  %v3476_v52 = vcombine.low %v769_v39, %v773_v40  ;;  %v824_v37 = vld [vmem:[#allocation8 + $0x250] sm:$0xff]  ;;  %v825_v39 = vld [vmem:[#allocation8 + $0x258] sm:$0xff] }
 0x262   :  { %2392 = vmatpush1.bf16.msra.mxu1 %v3670_v45  ;;  %2474 = vmatpush1.bf16.msra.mxu0 %v3672_v46  ;;  %v776_v45 = vld [vmem:[#allocation8 + $0xd0] sm:$0xff]  ;;  %v829_v40 = vld [vmem:[#allocation8 + $0x278] sm:$0xff] }
 0x263   :  { %2393 = vmatprep.subr.bf16.mxu1 %v3679_v47  ;;  %2475 = vmatprep.subr.bf16.mxu0 %v3681_v48  ;;  %v780_v46 = vld [vmem:[#allocation8 + $0xf0] sm:$0xff]  ;;  %v777_v47 = vld [vmem:[#allocation8 + $0xd8] sm:$0xff] }
 0x264   :  { %v781_v48 = vld [vmem:[#allocation8 + $0xf8] sm:$0xff]  ;;  %v3483_v53 = vcombine.high %v776_v45, %v780_v46  ;;  %v828_v38 = vld [vmem:[#allocation8 + $0x270] sm:$0xff] }
 0x265   :  { %v3485_v54 = vcombine.high %v777_v47, %v781_v48  ;;  %v3484_v61 = vcombine.low %v777_v47, %v781_v48  ;;  %v833_v47 = vld [vmem:[#allocation8 + $0x298] sm:$0xff] }
 0x266   :  { %2394 = vmatpush1.bf16.msra.mxu1 %v3678_v56  ;;  %2476 = vmatpush1.bf16.msra.mxu0 %v3680_v57  ;;  %v784_v56 = vld [vmem:[#allocation8 + $0x110] sm:$0xff]  ;;  %v837_v48 = vld [vmem:[#allocation8 + $0x2b8] sm:$0xff] }
 0x267   :  { %2395 = vmatprep.subr.bf16.mxu1 %v3687_v59  ;;  %2477 = vmatprep.subr.bf16.mxu0 %v3689_v60  ;;  %v788_v57 = vld [vmem:[#allocation8 + $0x130] sm:$0xff]  ;;  %v789_v59 = vld [vmem:[#allocation8 + $0x138] sm:$0xff]  ;;  %v3482_v60 = vcombine.low %v776_v45, %v780_v46 }
 0x268   :  { %v3491_v62 = vcombine.high %v784_v56, %v788_v57  ;;  %v832_v45 = vld [vmem:[#allocation8 + $0x290] sm:$0xff] }
 0x269   :  { %v836_v46 = vld [vmem:[#allocation8 + $0x2b0] sm:$0xff] }
 0x26a   :  { %2396 = vmatpush1.bf16.msra.mxu1 %v3686_v1  ;;  %2478 = vmatpush1.bf16.msra.mxu0 %v3688_v2  ;;  %v796_v1 = vld [vmem:[#allocation8 + $0x170] sm:$0xff]  ;;  %v793_v2 = vld [vmem:[#allocation8 + $0x158] sm:$0xff] }
 0x26b   :  { %2397 = vmatprep.subr.bf16.mxu1 %v3695_v4  ;;  %2479 = vmatprep.subr.bf16.mxu0 %v3697_v5  ;;  %v3490_v4 = vcombine.low %v784_v56, %v788_v57  ;;  %v3499_v6 = vcombine.high %v792_v0, %v796_v1  ;;  %v3501_v7 = vcombine.high %v793_v2, %v797_v3  ;;  %v840_v56 = vld [vmem:[#allocation8 + $0x2d0] sm:$0xff] }
 0x26c   :  { %v3498_v14 = vcombine.low %v792_v0, %v796_v1  ;;  %v844_v57 = vld [vmem:[#allocation8 + $0x2f0] sm:$0xff] }
 0x26d   :  { %v848_v0 = vld [vmem:[#allocation8 + $0x310] sm:$0xff] }
 0x26e   :  { %2398 = vmatpush1.bf16.msra.mxu1 %v3694_v12  ;;  %2480 = vmatpush1.bf16.msra.mxu0 %v3696_v13  ;;  %v801_v12 = vld [vmem:[#allocation8 + $0x198] sm:$0xff]  ;;  %v852_v1 = vld [vmem:[#allocation8 + $0x330] sm:$0xff] }
 0x26f   :  { %2399 = vmatprep.subr.bf16.mxu1 %v3703_v15  ;;  %2481 = vmatprep.subr.bf16.mxu0 %v3705_v17  ;;  %v805_v13 = vld [vmem:[#allocation8 + $0x1b8] sm:$0xff]  ;;  %v3500_v15 = vcombine.low %v793_v2, %v797_v3  ;;  %v3507_v17 = vcombine.high %v800_v10, %v804_v11 }
 0x270   :  { %v3509_v18 = vcombine.high %v801_v12, %v805_v13  ;;  %v3508_v23 = vcombine.low %v801_v12, %v805_v13  ;;  %v849_v2 = vld [vmem:[#allocation8 + $0x318] sm:$0xff] }
 0x271   :  { %v853_v3 = vld [vmem:[#allocation8 + $0x338] sm:$0xff] }
 0x272   :  { %2400 = vmatpush1.bf16.msra.mxu1 %v3702_v21  ;;  %2482 = vmatpush1.bf16.msra.mxu0 %v3704_v22  ;;  %v813_v21 = vld [vmem:[#allocation8 + $0x1f8] sm:$0xff]  ;;  %v3506_v22 = vcombine.low %v800_v10, %v804_v11  ;;  %v856_v10 = vld [vmem:[#allocation8 + $0x350] sm:$0xff] }
 0x273   :  { %2492 = vmatprep.subr.bf16.mxu1 %v3459_v24  ;;  %2574 = vmatprep.subr.bf16.mxu0 %v3461_v25  ;;  %v3515_v24 = vcombine.high %v808_v49, %v812_v19  ;;  %v3517_v25 = vcombine.high %v809_v20, %v813_v21  ;;  %v860_v11 = vld [vmem:[#allocation8 + $0x370] sm:$0xff]  ;;  %v857_v12 = vld [vmem:[#allocation8 + $0x358] sm:$0xff] }
 0x274   :  { %v861_v13 = vld [vmem:[#allocation8 + $0x378] sm:$0xff] }
 0x275   :  { %2402 = vmatmul.mubr.bf16.vlgmr.msra.gmra.mrb[4].mxu1 %v4407_v33  ;;  %2484 = vmatmul.mubr.bf16.vlgmr.msra.gmra.mrb[8].mxu0 %v4407_v33 }
 0x276   :  { %2493 = vmatpush1.bf16.msra.mxu1 %v3458_v32  ;;  %2524 = vmatprep.mubr.bf16.mxu1 %v4390_v8  ;;  %v3514_v32 = vcombine.low %v808_v49, %v812_v19  ;;  %v864_v49 = vld [vmem:[#allocation8 + $0x390] sm:$0xff] }
 0x277   :  { %2575 = vmatpush1.bf16.msra.mxu0 %v3460_v34  ;;  %2606 = vmatprep.mubr.bf16.mxu0 %v4390_v8  ;;  %v785_v8 = vld [vmem:[#allocation8 + $0x118] sm:$0xff]  ;;  %v3516_v34 = vcombine.low %v809_v20, %v813_v21  ;;  %v868_v19 = vld [vmem:[#allocation8 + $0x3b0] sm:$0xff] }
 0x278   :  { %2494 = vmatprep.subr.bf16.mxu1 %v3467_v35  ;;  %2576 = vmatprep.subr.bf16.mxu0 %v3469_v36  ;;  %v3493_v63 = vcombine.high %v785_v8, %v789_v59  ;;  %v3492_v5 = vcombine.low %v785_v8, %v789_v59  ;;  %v3523_v35 = vcombine.high %v816_v26, %v820_v29  ;;  %v841_v8 = vld [vmem:[#allocation8 + $0x2d8] sm:$0xff] }
 0x279   :  { %v3525_v36 = vcombine.high %v817_v55, %v821_v31  ;;  %v845_v59 = vld [vmem:[#allocation8 + $0x2f8] sm:$0xff] }
 0x27a   :  { %2495 = vmatpush1.bf16.msra.mxu1 %v3466_v41  ;;  %v3522_v41 = vcombine.low %v816_v26, %v820_v29  ;;  %v865_v20 = vld [vmem:[#allocation8 + $0x398] sm:$0xff]  ;;  %v872_v26 = vld [vmem:[#allocation8 + $0x3d0] sm:$0xff] }
 0x27b   :  { %2577 = vmatpush1.bf16.msra.mxu0 %v3468_v42  ;;  %2496 = vmatprep.subr.bf16.mxu1 %v3475_v43  ;;  %v3524_v42 = vcombine.low %v817_v55, %v821_v31  ;;  %v3531_v43 = vcombine.high %v824_v37, %v828_v38  ;;  %v869_v21 = vld [vmem:[#allocation8 + $0x3b8] sm:$0xff]  ;;  %v876_v29 = vld [vmem:[#allocation8 + $0x3f0] sm:$0xff] }
 0x27c   :  { %2578 = vmatprep.subr.bf16.mxu0 %v3477_v44  ;;  %v3533_v44 = vcombine.high %v825_v39, %v829_v40  ;;  %v873_v55 = vld [vmem:[#allocation8 + $0x3d8] sm:$0xff] }
 0x27d   :  { %v877_v31 = vld [vmem:[#allocation8 + $0x3f8] sm:$0xff] }
 0x27e   :  { %2497 = vmatpush1.bf16.msra.mxu1 %v3474_v51  ;;  %v3530_v51 = vcombine.low %v824_v37, %v828_v38  ;;  %v880_v37 = vld [vmem:[#allocation8 + $0x410] sm:$0xff] }
 0x27f   :  { %2579 = vmatpush1.bf16.msra.mxu0 %v3476_v52  ;;  %2498 = vmatprep.subr.bf16.mxu1 %v3483_v53  ;;  %v3532_v52 = vcombine.low %v825_v39, %v829_v40  ;;  %v3539_v53 = vcombine.high %v832_v45, %v836_v46  ;;  %v884_v38 = vld [vmem:[#allocation8 + $0x430] sm:$0xff]  ;;  %v881_v39 = vld [vmem:[#allocation8 + $0x418] sm:$0xff] }
 0x280   :  { %2580 = vmatprep.subr.bf16.mxu0 %v3485_v54  ;;  %v3541_v54 = vcombine.high %v833_v47, %v837_v48  ;;  %v885_v40 = vld [vmem:[#allocation8 + $0x438] sm:$0xff] }
 0x282   :  { %2499 = vmatpush1.bf16.msra.mxu1 %v3482_v60  ;;  %v3538_v60 = vcombine.low %v832_v45, %v836_v46  ;;  %v888_v45 = vld [vmem:[#allocation8 + $0x450] sm:$0xff] }
 0x283   :  { %2581 = vmatpush1.bf16.msra.mxu0 %v3484_v61  ;;  %2500 = vmatprep.subr.bf16.mxu1 %v3491_v62  ;;  %v3540_v61 = vcombine.low %v833_v47, %v837_v48  ;;  %v3547_v62 = vcombine.high %v840_v56, %v844_v57  ;;  %v892_v46 = vld [vmem:[#allocation8 + $0x470] sm:$0xff]  ;;  %v3586_v47 = vcombine.low %v880_v37, %v884_v38  ;;  %v889_v48 = vld [vmem:[#allocation8 + $0x458] sm:$0xff] }
 0x284   :  { %2582 = vmatprep.subr.bf16.mxu0 %v3493_v63  ;;  %v3549_v63 = vcombine.high %v841_v8, %v845_v59 }
 0x286   :  { %2501 = vmatpush1.bf16.msra.mxu1 %v3490_v4  ;;  %v3546_v4 = vcombine.low %v840_v56, %v844_v57  ;;  %v900_v56 = vld [vmem:[#allocation8 + $0x4b0] sm:$0xff] }
 0x287   :  { %2583 = vmatpush1.bf16.msra.mxu0 %v3492_v5  ;;  %2502 = vmatprep.subr.bf16.mxu1 %v3499_v6  ;;  %v3548_v5 = vcombine.low %v841_v8, %v845_v59  ;;  %v3555_v6 = vcombine.high %v848_v0, %v852_v1  ;;  %v897_v8 = vld [vmem:[#allocation8 + $0x498] sm:$0xff] }
 0x288   :  { %2584 = vmatprep.subr.bf16.mxu0 %v3501_v7  ;;  %v3557_v7 = vcombine.high %v849_v2, %v853_v3  ;;  %v901_v59 = vld [vmem:[#allocation8 + $0x4b8] sm:$0xff] }
 0x28a   :  { %2503 = vmatpush1.bf16.msra.mxu1 %v3498_v14  ;;  %v3554_v14 = vcombine.low %v848_v0, %v852_v1  ;;  %v904_v0 = vld [vmem:[#allocation8 + $0x4d0] sm:$0xff] }
 0x28b   :  { %2585 = vmatpush1.bf16.msra.mxu0 %v3500_v15  ;;  %2504 = vmatprep.subr.bf16.mxu1 %v3507_v17  ;;  %v3556_v15 = vcombine.low %v849_v2, %v853_v3  ;;  %v3563_v17 = vcombine.high %v856_v10, %v860_v11  ;;  %v908_v1 = vld [vmem:[#allocation8 + $0x4f0] sm:$0xff]  ;;  %v905_v2 = vld [vmem:[#allocation8 + $0x4d8] sm:$0xff] }
 0x28c   :  { %2586 = vmatprep.subr.bf16.mxu0 %v3509_v18  ;;  %v3565_v18 = vcombine.high %v857_v12, %v861_v13  ;;  %v909_v3 = vld [vmem:[#allocation8 + $0x4f8] sm:$0xff] }
 0x28e   :  { %2505 = vmatpush1.bf16.msra.mxu1 %v3506_v22  ;;  %v3562_v22 = vcombine.low %v856_v10, %v860_v11  ;;  %v916_v10 = vld [vmem:[#allocation8 + $0x530] sm:$0xff]  ;;  %v913_v11 = vld [vmem:[#allocation8 + $0x518] sm:$0xff] }
 0x28f   :  { %2587 = vmatpush1.bf16.msra.mxu0 %v3508_v23  ;;  %2506 = vmatprep.subr.bf16.mxu1 %v3515_v24  ;;  %v3564_v23 = vcombine.low %v857_v12, %v861_v13  ;;  %v3571_v24 = vcombine.high %v864_v49, %v868_v19  ;;  %v917_v12 = vld [vmem:[#allocation8 + $0x538] sm:$0xff]  ;;  %v3612_v13 = vcombine.low %v905_v2, %v909_v3 }
 0x290   :  { %2588 = vmatprep.subr.bf16.mxu0 %v3517_v25  ;;  %v3573_v25 = vcombine.high %v865_v20, %v869_v21 }
 0x292   :  { %2507 = vmatpush1.bf16.msra.mxu1 %v3514_v32  ;;  %v3570_v32 = vcombine.low %v864_v49, %v868_v19  ;;  %v921_v49 = vld [vmem:[#allocation8 + $0x558] sm:$0xff] }
 0x293   :  { %2589 = vmatpush1.bf16.msra.mxu0 %v3516_v34  ;;  %2508 = vmatprep.subr.bf16.mxu1 %v3523_v35  ;;  %v3572_v34 = vcombine.low %v865_v20, %v869_v21  ;;  %v3579_v35 = vcombine.high %v872_v26, %v876_v29  ;;  %v925_v19 = vld [vmem:[#allocation8 + $0x578] sm:$0xff]  ;;  %v3620_v21 = vcombine.low %v913_v11, %v917_v12 }
 0x294   :  { %2590 = vmatprep.subr.bf16.mxu0 %v3525_v36  ;;  %v3581_v36 = vcombine.high %v873_v55, %v877_v31 }
 0x296   :  { %2509 = vmatpush1.bf16.msra.mxu1 %v3522_v41  ;;  %v3578_v41 = vcombine.low %v872_v26, %v876_v29  ;;  %v929_v26 = vld [vmem:[#allocation8 + $0x598] sm:$0xff] }
 0x297   :  { %2591 = vmatpush1.bf16.msra.mxu0 %v3524_v42  ;;  %2510 = vmatprep.subr.bf16.mxu1 %v3531_v43  ;;  %v3580_v42 = vcombine.low %v873_v55, %v877_v31  ;;  %v3587_v43 = vcombine.high %v880_v37, %v884_v38  ;;  %v933_v29 = vld [vmem:[#allocation8 + $0x5b8] sm:$0xff]  ;;  %v3628_v31 = vcombine.low %v921_v49, %v925_v19 }
 0x298   :  { %2592 = vmatprep.subr.bf16.mxu0 %v3533_v44  ;;  %v3589_v44 = vcombine.high %v881_v39, %v885_v40  ;;  %v937_v37 = vld [vmem:[#allocation8 + $0x5d8] sm:$0xff] }
 0x299   :  { %v941_v38 = vld [vmem:[#allocation8 + $0x5f8] sm:$0xff] }
 0x29a   :  { %2511 = vmatpush1.bf16.msra.mxu1 %v3530_v51  ;;  %v893_v51 = vld [vmem:[#allocation8 + $0x478] sm:$0xff] }
 0x29b   :  { %2593 = vmatpush1.bf16.msra.mxu0 %v3532_v52  ;;  %2512 = vmatprep.subr.bf16.mxu1 %v3539_v53  ;;  %v3588_v52 = vcombine.low %v881_v39, %v885_v40  ;;  %v3595_v53 = vcombine.high %v888_v45, %v892_v46  ;;  %v3597_v57 = vcombine.high %v889_v48, %v893_v51 }
 0x29c   :  { %2594 = vmatprep.subr.bf16.mxu0 %v3541_v54  ;;  %v896_v54 = vld [vmem:[#allocation8 + $0x490] sm:$0xff]  ;;  %v3636_v40 = vcombine.low %v929_v26, %v933_v29 }
 0x29e   :  { %2513 = vmatpush1.bf16.msra.mxu1 %v3538_v60  ;;  %v3594_v60 = vcombine.low %v888_v45, %v892_v46  ;;  %v945_v45 = vld [vmem:[#allocation8 + $0x618] sm:$0xff] }
 0x29f   :  { %2595 = vmatpush1.bf16.msra.mxu0 %v3540_v61  ;;  %2514 = vmatprep.subr.bf16.mxu1 %v3547_v62  ;;  %v3596_v61 = vcombine.low %v889_v48, %v893_v51  ;;  %v3603_v62 = vcombine.high %v896_v54, %v900_v56  ;;  %v949_v46 = vld [vmem:[#allocation8 + $0x638] sm:$0xff]  ;;  %v3644_v48 = vcombine.low %v937_v37, %v941_v38 }
 0x2a0   :  { %2596 = vmatprep.subr.bf16.mxu0 %v3549_v63  ;;  %v3605_v63 = vcombine.high %v897_v8, %v901_v59 }
 0x2a2   :  { %2515 = vmatpush1.bf16.msra.mxu1 %v3546_v4  ;;  %v3602_v4 = vcombine.low %v896_v54, %v900_v56  ;;  %v956_v54 = vld [vmem:[#allocation8 + $0x670] sm:$0xff]  ;;  %v953_v56 = vld [vmem:[#allocation8 + $0x658] sm:$0xff] }
 0x2a3   :  { %2597 = vmatpush1.bf16.msra.mxu0 %v3548_v5  ;;  %2516 = vmatprep.subr.bf16.mxu1 %v3555_v6  ;;  %v3611_v5 = vcombine.high %v904_v0, %v908_v1  ;;  %v3613_v6 = vcombine.high %v905_v2, %v909_v3 }
 0x2a4   :  { %2598 = vmatprep.subr.bf16.mxu0 %v3557_v7  ;;  %v912_v7 = vld [vmem:[#allocation8 + $0x510] sm:$0xff] }
 0x2a5   :  { %v3618_v20 = vcombine.low %v912_v7, %v916_v10 }
 0x2a6   :  { %2517 = vmatpush1.bf16.msra.mxu1 %v3554_v14  ;;  %v3619_v14 = vcombine.high %v912_v7, %v916_v10  ;;  %v969_v7 = vld [vmem:[#allocation8 + $0x6d8] sm:$0xff] }
 0x2a7   :  { %2599 = vmatpush1.bf16.msra.mxu0 %v3556_v15  ;;  %2518 = vmatprep.subr.bf16.mxu1 %v3563_v17  ;;  %v3621_v15 = vcombine.high %v913_v11, %v917_v12  ;;  %v920_v17 = vld [vmem:[#allocation8 + $0x550] sm:$0xff]  ;;  %v973_v10 = vld [vmem:[#allocation8 + $0x6f8] sm:$0xff] }
 0x2a8   :  { %2600 = vmatprep.subr.bf16.mxu0 %v3565_v18  ;;  %v924_v18 = vld [vmem:[#allocation8 + $0x570] sm:$0xff] }
 0x2a9   :  { %v3626_v55 = vcombine.low %v920_v17, %v924_v18 }
 0x2aa   :  { %2519 = vmatpush1.bf16.msra.mxu1 %v3562_v22  ;;  %v3627_v22 = vcombine.high %v920_v17, %v924_v18  ;;  %v977_v17 = vld [vmem:[#allocation8 + $0x718] sm:$0xff] }
 0x2ab   :  { %2601 = vmatpush1.bf16.msra.mxu0 %v3564_v23  ;;  %2520 = vmatprep.subr.bf16.mxu1 %v3571_v24  ;;  %v3629_v23 = vcombine.high %v921_v49, %v925_v19  ;;  %v928_v24 = vld [vmem:[#allocation8 + $0x590] sm:$0xff]  ;;  %v981_v18 = vld [vmem:[#allocation8 + $0x738] sm:$0xff]  ;;  %v3676_v19 = vcombine.low %v969_v7, %v973_v10 }
 0x2ac   :  { %2602 = vmatprep.subr.bf16.mxu0 %v3573_v25  ;;  %v932_v25 = vld [vmem:[#allocation8 + $0x5b0] sm:$0xff] }
 0x2ad   :  { %v3634_v39 = vcombine.low %v928_v24, %v932_v25 }
 0x2ae   :  { %2521 = vmatpush1.bf16.msra.mxu1 %v3570_v32  ;;  %v3635_v32 = vcombine.high %v928_v24, %v932_v25  ;;  %v985_v24 = vld [vmem:[#allocation8 + $0x758] sm:$0xff] }
 0x2af   :  { %2603 = vmatpush1.bf16.msra.mxu0 %v3572_v34  ;;  %2522 = vmatprep.subr.bf16.mxu1 %v3579_v35  ;;  %v3637_v34 = vcombine.high %v929_v26, %v933_v29  ;;  %v936_v35 = vld [vmem:[#allocation8 + $0x5d0] sm:$0xff]  ;;  %v989_v25 = vld [vmem:[#allocation8 + $0x778] sm:$0xff]  ;;  %v3684_v29 = vcombine.low %v977_v17, %v981_v18 }
 0x2b0   :  { %2604 = vmatprep.subr.bf16.mxu0 %v3581_v36  ;;  %v940_v36 = vld [vmem:[#allocation8 + $0x5f0] sm:$0xff] }
 0x2b2   :  { %2523 = vmatpush1.bf16.msra.mxu1 %v3578_v41  ;;  %v3643_v41 = vcombine.high %v936_v35, %v940_v36 }
 0x2b3   :  { %2605 = vmatpush1.bf16.msra.mxu0 %v3580_v42  ;;  %2533 = vmatprep.subr.bf16.mxu1 %v3587_v43  ;;  %v3645_v42 = vcombine.high %v937_v37, %v941_v38  ;;  %v944_v43 = vld [vmem:[#allocation8 + $0x610] sm:$0xff]  ;;  %v3692_v38 = vcombine.low %v985_v24, %v989_v25 }
 0x2b4   :  { %2615 = vmatprep.subr.bf16.mxu0 %v3589_v44  ;;  %v948_v44 = vld [vmem:[#allocation8 + $0x630] sm:$0xff] }
 0x2b5   :  { %2525 = vmatmul.mubr.bf16.vlgmr.msra.gmra.mrb[8].mxu1 %v4392_v9  ;;  %v3651_v51 = vcombine.high %v944_v43, %v948_v44 }
 0x2b6   :  { %2607 = vmatmul.mubr.bf16.vlgmr.msra.gmra.mrb[12].mxu0 %v4392_v9  ;;  %2534 = vmatpush1.bf16.msra.mxu1 %v3586_v47  ;;  %v3604_v9 = vcombine.low %v897_v8, %v901_v59  ;;  %v3642_v47 = vcombine.low %v936_v35, %v940_v36  ;;  %v3650_v8 = vcombine.low %v944_v43, %v948_v44  ;;  %v993_v35 = vld [vmem:[#allocation8 + $0x798] sm:$0xff] }
 0x2b7   :  { %2565 = vmatprep.mubr.bf16.mxu1 %v4396_v16  ;;  %2616 = vmatpush1.bf16.msra.mxu0 %v3588_v52  ;;  %v3653_v52 = vcombine.high %v945_v45, %v949_v46  ;;  %v3652_v59 = vcombine.low %v945_v45, %v949_v46  ;;  %v997_v36 = vld [vmem:[#allocation8 + $0x7b8] sm:$0xff] }
 0x2b8   :  { %2647 = vmatprep.mubr.bf16.mxu0 %v4396_v16  ;;  %2535 = vmatprep.subr.bf16.mxu1 %v3595_v53  ;;  %v3610_v16 = vcombine.low %v904_v0, %v908_v1  ;;  %v952_v53 = vld [vmem:[#allocation8 + $0x650] sm:$0xff]  ;;  %v961_v0 = vld [vmem:[#allocation8 + $0x698] sm:$0xff]  ;;  %v3700_v46 = vcombine.low %v993_v35, %v997_v36 }
 0x2b9   :  { %2617 = vmatprep.subr.bf16.mxu0 %v3597_v57  ;;  %v957_v57 = vld [vmem:[#allocation8 + $0x678] sm:$0xff]  ;;  %v3658_v2 = vcombine.low %v952_v53, %v956_v54 }
 0x2ba   :  { %2536 = vmatpush1.bf16.msra.mxu1 %v3594_v60  ;;  %v3659_v60 = vcombine.high %v952_v53, %v956_v54  ;;  %v965_v1 = vld [vmem:[#allocation8 + $0x6b8] sm:$0xff]  ;;  %v3660_v3 = vcombine.low %v953_v56, %v957_v57  ;;  %v4022_v53 = vld [vmem:[#allocation10 + $0x40] sm:$0xff]  }
 0x2bb   :  { %2618 = vmatpush1.bf16.msra.mxu0 %v3596_v61  ;;  %2537 = vmatprep.subr.bf16.mxu1 %v3603_v62  ;;  %v3661_v61 = vcombine.high %v953_v56, %v957_v57  ;;  %v960_v62 = vld [vmem:[#allocation8 + $0x690] sm:$0xff]  ;;  %v3668_v12 = vcombine.low %v961_v0, %v965_v1  ;;  %v1001_v43 = vld [vmem:[#allocation8 + $0x7d8] sm:$0xff]  ;;  %v4023_v54 = vld [vmem:[#allocation10 + $0xc0] sm:$0xff]  }
 0x2bc   :  { %2619 = vmatprep.subr.bf16.mxu0 %v3605_v63  ;;  %v964_v63 = vld [vmem:[#allocation8 + $0x6b0] sm:$0xff]  ;;  %v1005_v44 = vld [vmem:[#allocation8 + $0x7f8] sm:$0xff]  ;;  %v4024_v56 = vld [vmem:[#allocation10] sm:$0xff]  }
 0x2bd   :  { %v3666_v11 = vcombine.low %v960_v62, %v964_v63  ;;  %v4025_v57 = vld [vmem:[#allocation10 + $0x80] sm:$0xff]  }
 0x2be   :  { %2538 = vmatpush1.bf16.msra.mxu1 %v3602_v4  ;;  %v3667_v4 = vcombine.high %v960_v62, %v964_v63  ;;  %v4030_v62 = vld [vmem:[#allocation10 + $0x50] sm:$0xff]  }
 0x2bf   :  { %2620 = vmatpush1.bf16.msra.mxu0 %v3604_v9  ;;  %2539 = vmatprep.subr.bf16.mxu1 %v3611_v5  ;;  %v3669_v9 = vcombine.high %v961_v0, %v965_v1  ;;  %v968_v5 = vld [vmem:[#allocation8 + $0x6d0] sm:$0xff] }
 0x2c0   :  { %2621 = vmatprep.subr.bf16.mxu0 %v3613_v6  ;;  %v972_v6 = vld [vmem:[#allocation8 + $0x6f0] sm:$0xff] }
 0x2c1   :  { %v3674_v49 = vcombine.low %v968_v5, %v972_v6  ;;  %v4031_v63 = vld [vmem:[#allocation10 + $0xd0] sm:$0xff]  }
 0x2c2   :  { %2540 = vmatpush1.bf16.msra.mxu1 %v3610_v16  ;;  %v3675_v16 = vcombine.high %v968_v5, %v972_v6  ;;  %v4032_v0 = vld [vmem:[#allocation10 + $0x10] sm:$0xff]   ;;  %v4039_v5 = vld [vmem:[#allocation10 + $0xe0] sm:$0xff]  }
 0x2c3   :  { %2622 = vmatpush1.bf16.msra.mxu0 %v3612_v13  ;;  %2541 = vmatprep.subr.bf16.mxu1 %v3619_v14  ;;  %v3677_v13 = vcombine.high %v969_v7, %v973_v10  ;;  %v976_v14 = vld [vmem:[#allocation8 + $0x710] sm:$0xff]  ;;  %v4040_v6 = vld [vmem:[#allocation10 + $0x20] sm:$0xff]   ;;  %v4042_v10 = vld [vmem:[#allocation10 + $0x68] sm:$0xff]  }
 0x2c4   :  { %2623 = vmatprep.subr.bf16.mxu0 %v3621_v15  ;;  %v980_v15 = vld [vmem:[#allocation8 + $0x730] sm:$0xff]  ;;  %v4041_v7 = vld [vmem:[#allocation10 + $0xa0] sm:$0xff]  }
 0x2c5   :  { %v3682_v26 = vcombine.low %v976_v14, %v980_v15  ;;  %v4033_v1 = vld [vmem:[#allocation10 + $0x90] sm:$0xff]  }
 0x2c6   :  { %2542 = vmatpush1.bf16.msra.mxu1 %v3618_v20  ;;  %v3683_v20 = vcombine.high %v976_v14, %v980_v15  ;;  %v4047_v14 = vld [vmem:[#allocation10 + $0xf0] sm:$0xff]  }
 0x2c7   :  { %2624 = vmatpush1.bf16.msra.mxu0 %v3620_v21  ;;  %2543 = vmatprep.subr.bf16.mxu1 %v3627_v22  ;;  %v3685_v21 = vcombine.high %v977_v17, %v981_v18  ;;  %v984_v22 = vld [vmem:[#allocation8 + $0x750] sm:$0xff]  ;;  %v4050_v18 = vld [vmem:[#allocation10 + $0x78] sm:$0xff]  }
 0x2c8   :  { %2625 = vmatprep.subr.bf16.mxu0 %v3629_v23  ;;  %v988_v23 = vld [vmem:[#allocation8 + $0x770] sm:$0xff] }
 0x2c9   :  { %v3690_v37 = vcombine.low %v984_v22, %v988_v23  ;;  %v4048_v15 = vld [vmem:[#allocation10 + $0x30] sm:$0xff]  }
 0x2ca   :  { %2544 = vmatpush1.bf16.msra.mxu1 %v3626_v55  ;;  %v3691_v55 = vcombine.high %v984_v22, %v988_v23  ;;  %v4049_v17 = vld [vmem:[#allocation10 + $0xb0] sm:$0xff]   ;;  %v4055_v22 = vld [vmem:[#allocation10 + $0x1c0] sm:$0xff]  }
 0x2cb   :  { %2626 = vmatpush1.bf16.msra.mxu0 %v3628_v31  ;;  %2545 = vmatprep.subr.bf16.mxu1 %v3635_v32  ;;  %v3693_v31 = vcombine.high %v985_v24, %v989_v25  ;;  %v992_v32 = vld [vmem:[#allocation8 + $0x790] sm:$0xff] }
 0x2cc   :  { %2627 = vmatprep.subr.bf16.mxu0 %v3637_v34  ;;  %v996_v34 = vld [vmem:[#allocation8 + $0x7b0] sm:$0xff] }
 0x2cd   :  { %v3698_v45 = vcombine.low %v992_v32, %v996_v34  ;;  %v4422_v23 = vld [vmem:[%s4463_s6] sm:$0xff] }
 0x2ce   :  { %2546 = vmatpush1.bf16.msra.mxu1 %v3634_v39  ;;  %v3699_v39 = vcombine.high %v992_v32, %v996_v34  ;;  %v1011_v24 = vrot.slane %v4422_v23, %v4365_v28  ;;  %v1019_v25 = vrot.slane %v4422_v23, %v330_v58 }
 0x2cf   :  { %2628 = vmatpush1.bf16.msra.mxu0 %v3636_v40  ;;  %2547 = vmatprep.subr.bf16.mxu1 %v3643_v41  ;;  %v3701_v40 = vcombine.high %v993_v35, %v997_v36  ;;  %v1000_v41 = vld [vmem:[#allocation8 + $0x7d0] sm:$0xff] }
 0x2d0   :  { %2629 = vmatprep.subr.bf16.mxu0 %v3645_v42  ;;  %v1004_v42 = vld [vmem:[#allocation8 + $0x7f0] sm:$0xff] }
 0x2d2   :  { %2548 = vmatpush1.bf16.msra.mxu1 %v3642_v47  ;;  %v3707_v47 = vcombine.high %v1000_v41, %v1004_v42 }
 0x2d3   :  { %2630 = vmatpush1.bf16.msra.mxu0 %v3644_v48  ;;  %2549 = vmatprep.subr.bf16.mxu1 %v3651_v51  ;;  %v3709_v48 = vcombine.high %v1001_v43, %v1005_v44  ;;  %v3706_v51 = vcombine.low %v1000_v41, %v1004_v42 }
 0x2d4   :  { %2631 = vmatprep.subr.bf16.mxu0 %v3653_v52  ;;  %v3708_v52 = vcombine.low %v1001_v43, %v1005_v44 }
 0x2d6   :  { %2550 = vmatpush1.bf16.msra.mxu1 %v3650_v8  ;;  %v4026_v8 = vld [vmem:[#allocation10 + $0x48] sm:$0xff]  }
 0x2d7   :  { %2632 = vmatpush1.bf16.msra.mxu0 %v3652_v59  ;;  %2551 = vmatprep.subr.bf16.mxu1 %v3659_v60  ;;  %v4027_v59 = vld [vmem:[#allocation10 + $0xc8] sm:$0xff]  }
 0x2d8   :  { %2633 = vmatprep.subr.bf16.mxu0 %v3661_v61  ;;  %v4028_v60 = vld [vmem:[#allocation10 + $0x8] sm:$0xff]  }
 0x2d9   :  { %v4029_v61 = vld [vmem:[#allocation10 + $0x88] sm:$0xff]  }
 0x2da   :  { %2552 = vmatpush1.bf16.msra.mxu1 %v3658_v2  ;;  %v4034_v2 = vld [vmem:[#allocation10 + $0x58] sm:$0xff]  }
 0x2db   :  { %2634 = vmatpush1.bf16.msra.mxu0 %v3660_v3  ;;  %2553 = vmatprep.subr.bf16.mxu1 %v3667_v4  ;;  %v4035_v3 = vld [vmem:[#allocation10 + $0xd8] sm:$0xff]  }
 0x2dc   :  { %2635 = vmatprep.subr.bf16.mxu0 %v3669_v9  ;;  %v4036_v4 = vld [vmem:[#allocation10 + $0x18] sm:$0xff]   ;;  %v4038_v9 = vld [vmem:[#allocation10 + $0x60] sm:$0xff]  }
 0x2de   :  { %2554 = vmatpush1.bf16.msra.mxu1 %v3666_v11  ;;  %v4043_v11 = vld [vmem:[#allocation10 + $0xe8] sm:$0xff]  }
 0x2df   :  { %2636 = vmatpush1.bf16.msra.mxu0 %v3668_v12  ;;  %2555 = vmatprep.subr.bf16.mxu1 %v3675_v16  ;;  %v4044_v12 = vld [vmem:[#allocation10 + $0x28] sm:$0xff]  }
 0x2e0   :  { %2637 = vmatprep.subr.bf16.mxu0 %v3677_v13  ;;  %v4045_v16 = vld [vmem:[#allocation10 + $0xa8] sm:$0xff]   ;;  %v4046_v13 = vld [vmem:[#allocation10 + $0x70] sm:$0xff]  }
 0x2e2   :  { %2556 = vmatpush1.bf16.msra.mxu1 %v3674_v49  ;;  %v4051_v49 = vld [vmem:[#allocation10 + $0xf8] sm:$0xff]  }
 0x2e3   :  { %2638 = vmatpush1.bf16.msra.mxu0 %v3676_v19  ;;  %2557 = vmatprep.subr.bf16.mxu1 %v3683_v20  ;;  %v4052_v19 = vld [vmem:[#allocation10 + $0x38] sm:$0xff]  }
 0x2e4   :  { %2639 = vmatprep.subr.bf16.mxu0 %v3685_v21  ;;  %v4053_v20 = vld [vmem:[#allocation10 + $0xb8] sm:$0xff]   ;;  %v4054_v21 = vld [vmem:[#allocation10 + $0x140] sm:$0xff]  }
 0x2e6   :  { %2558 = vmatpush1.bf16.msra.mxu1 %v3682_v26  ;;  %v1015_v26 = vrot.slane %v4422_v23, %v4371_v30 }
 0x2e7   :  { %2640 = vmatpush1.bf16.msra.mxu0 %v3684_v29  ;;  %2559 = vmatprep.subr.bf16.mxu1 %v3691_v55  ;;  %v1023_v29 = vrot.slane %v4422_v23, %v334_v50  ;;  %v4057_v50 = vld [vmem:[#allocation10 + $0x180] sm:$0xff]  }
 0x2e8   :  { %2641 = vmatprep.subr.bf16.mxu0 %v3693_v31 }
 0x2ea   :  { %2560 = vmatpush1.bf16.msra.mxu1 %v3690_v37 }
 0x2eb   :  { %2642 = vmatpush1.bf16.msra.mxu0 %v3692_v38  ;;  %2561 = vmatprep.subr.bf16.mxu1 %v3699_v39 }
 0x2ec   :  { %2643 = vmatprep.subr.bf16.mxu0 %v3701_v40 }
 0x2ee   :  { %2562 = vmatpush1.bf16.msra.mxu1 %v3698_v45 }
 0x2ef   :  { %2644 = vmatpush1.bf16.msra.mxu0 %v3700_v46  ;;  %2563 = vmatprep.subr.bf16.mxu1 %v3707_v47  ;;  %v4056_v46 = vld [vmem:[#allocation10 + $0x100] sm:$0xff]  }
 0x2f0   :  { %2645 = vmatprep.subr.bf16.mxu0 %v3709_v48 }
 0x2f2   :  { %2564 = vmatpush1.bf16.msra.mxu1 %v3706_v51  ;;  %v4058_v51 = vld [vmem:[#allocation10 + $0x148] sm:$0xff]  }
 0x2f3   :  { %2646 = vmatpush1.bf16.msra.mxu0 %v3708_v52  ;;  %3775 = vmatprep.subr.bf16.mxu1 %v4022_v53  ;;  %v4059_v52 = vld [vmem:[#allocation10 + $0x1c8] sm:$0xff]  }
 0x2f4   :  { %3797 = vmatprep.subr.bf16.mxu0 %v4023_v54  ;;  %v4060_v53 = vld [vmem:[#allocation10 + $0x108] sm:$0xff]  }
 0x2f5   :  { %2566 = vmatmul.mubr.bf16.vlgmr.msra.gmra.mrb[8].mxu1 %v4407_v33  ;;  %v4061_v54 = vld [vmem:[#allocation10 + $0x188] sm:$0xff]  }
 0x2f6   :  { %2648 = vmatmul.mubr.bf16.vlgmr.msra.gmra.mrb[12].mxu0 %v4407_v33  ;;  %3776 = vmatpush3.bf16.msra.mxu1 %v4024_v56  ;;  %v4037_v33 = vld [vmem:[#allocation10 + $0x98] sm:$0xff]   ;;  %v4062_v56 = vld [vmem:[#allocation10 + $0x150] sm:$0xff]  }
 0x2f7   :  { %3798 = vmatpush3.bf16.msra.mxu0 %v4025_v57  ;;  %3777 = vmatprep.subr.bf16.mxu1 %v4026_v8  ;;  %v4063_v57 = vld [vmem:[#allocation10 + $0x1d0] sm:$0xff]  }
 0x2f8   :  { %3799 = vmatprep.subr.bf16.mxu0 %v4027_v59  ;;  %v4064_v8 = vld [vmem:[#allocation10 + $0x110] sm:$0xff]  }
 0x2f9   :  { %v4065_v59 = vld [vmem:[#allocation10 + $0x190] sm:$0xff]  }
 0x2fa   :  { %3778 = vmatpush3.bf16.msra.mxu1 %v4028_v60  ;;  %v4066_v60 = vld [vmem:[#allocation10 + $0x158] sm:$0xff]  }
 0x2fb   :  { %3800 = vmatpush3.bf16.msra.mxu0 %v4029_v61  ;;  %3779 = vmatprep.subr.bf16.mxu1 %v4030_v62  ;;  %v4067_v61 = vld [vmem:[#allocation10 + $0x1d8] sm:$0xff]  }
 0x2fc   :  { %3801 = vmatprep.subr.bf16.mxu0 %v4031_v63  ;;  %v4068_v62 = vld [vmem:[#allocation10 + $0x118] sm:$0xff]  }
 0x2fd   :  { %v4069_v63 = vld [vmem:[#allocation10 + $0x198] sm:$0xff]  }
 0x2fe   :  { %3780 = vmatpush3.bf16.msra.mxu1 %v4032_v0  ;;  %v4070_v0 = vld [vmem:[#allocation10 + $0x160] sm:$0xff]  }
 0x2ff   :  { %3802 = vmatpush3.bf16.msra.mxu0 %v4033_v1  ;;  %3781 = vmatprep.subr.bf16.mxu1 %v4034_v2  ;;  %v4071_v1 = vld [vmem:[#allocation10 + $0x1e0] sm:$0xff]  }
 0x300   :  { %3803 = vmatprep.subr.bf16.mxu0 %v4035_v3  ;;  %v4072_v2 = vld [vmem:[#allocation10 + $0x120] sm:$0xff]  }
 0x301   :  { %v4073_v3 = vld [vmem:[#allocation10 + $0x1a0] sm:$0xff]  }
 0x302   :  { %3782 = vmatpush3.bf16.msra.mxu1 %v4036_v4  ;;  %v4074_v4 = vld [vmem:[#allocation10 + $0x168] sm:$0xff]  }
 0x303   :  { %3804 = vmatpush3.bf16.msra.mxu0 %v4037_v33  ;;  %3783 = vmatprep.subr.bf16.mxu1 %v4038_v9  ;;  %v4075_v33 = vld [vmem:[#allocation10 + $0x1e8] sm:$0xff]  }
 0x304   :  { %3805 = vmatprep.subr.bf16.mxu0 %v4039_v5  ;;  %v4076_v9 = vld [vmem:[#allocation10 + $0x128] sm:$0xff]  }
 0x305   :  { %v4077_v5 = vld [vmem:[#allocation10 + $0x1a8] sm:$0xff]  }
 0x306   :  { %3784 = vmatpush3.bf16.msra.mxu1 %v4040_v6  ;;  %v4078_v6 = vld [vmem:[#allocation10 + $0x170] sm:$0xff]  }
 0x307   :  { %3806 = vmatpush3.bf16.msra.mxu0 %v4041_v7  ;;  %3785 = vmatprep.subr.bf16.mxu1 %v4042_v10  ;;  %v4079_v7 = vld [vmem:[#allocation10 + $0x1f0] sm:$0xff]  }
 0x308   :  { %3807 = vmatprep.subr.bf16.mxu0 %v4043_v11  ;;  %v4080_v10 = vld [vmem:[#allocation10 + $0x130] sm:$0xff]  }
 0x309   :  { %v4081_v11 = vld [vmem:[#allocation10 + $0x1b0] sm:$0xff]  }
 0x30a   :  { %3786 = vmatpush3.bf16.msra.mxu1 %v4044_v12  ;;  %v4082_v12 = vld [vmem:[#allocation10 + $0x178] sm:$0xff]  }
 0x30b   :  { %3808 = vmatpush3.bf16.msra.mxu0 %v4045_v16  ;;  %3787 = vmatprep.subr.bf16.mxu1 %v4046_v13  ;;  %v4083_v16 = vld [vmem:[#allocation10 + $0x1f8] sm:$0xff]  }
 0x30c   :  { %3809 = vmatprep.subr.bf16.mxu0 %v4047_v14  ;;  %v4084_v13 = vld [vmem:[#allocation10 + $0x138] sm:$0xff]  }
 0x30d   :  { %v4085_v14 = vld [vmem:[#allocation10 + $0x1b8] sm:$0xff]  }
 0x30e   :  { %3788 = vmatpush3.bf16.msra.mxu1 %v4048_v15  ;;  %v1026_v15 = vsub.s32 4, %v4362_v27 }
 0x30f   :  { %3810 = vmatpush3.bf16.msra.mxu0 %v4049_v17  ;;  %3789 = vmatprep.subr.bf16.mxu1 %v4050_v18  ;;  %v1034_v17 = vsub.s32 6, %v4362_v27  ;;  %v1030_v18 = vsub.s32 5, %v4362_v27 }
 0x310   :  { %3811 = vmatprep.subr.bf16.mxu0 %v4051_v49  ;;  %v1038_v49 = vsub.s32 7, %v4362_v27 }
 0x312   :  { %3790 = vmatpush3.bf16.msra.mxu1 %v4052_v19  ;;  %v1027_v19 = vrot.slane %v4422_v23, %v1026_v15 }
 0x313   :  { %3812 = vmatpush3.bf16.msra.mxu0 %v4053_v20  ;;  %3819 = vmatprep.subr.bf16.mxu1 %v4054_v21  ;;  %v1035_v20 = vrot.slane %v4422_v23, %v1034_v17  ;;  %v1031_v21 = vrot.slane %v4422_v23, %v1030_v18 }
 0x314   :  { %3841 = vmatprep.subr.bf16.mxu0 %v4055_v22  ;;  %v1039_v22 = vrot.slane %v4422_v23, %v1038_v49 }
 0x348   :  { %v2403_v55 = vpop.f32.mrb[4].mxu1  ;;  %v2485_v31 = vpop.f32.mrb[8].mxu0 }
 0x349   :  { %v3863_v32 = vadd.f32 %v2403_v55, %v1011_v24  ;;  %v3865_v34 = vadd.f32 %v2485_v31, %v1019_v25  ;;  %v2405_v35 = vpop.f32.mrb[5].mxu1  ;;  %v2487_v36 = vpop.f32.mrb[9].mxu0 }
 0x34a   :  { %v3864_v37 = vadd.f32 %v2405_v35, %v1015_v26  ;;  %v3866_v38 = vadd.f32 %v2487_v36, %v1023_v29  ;;  %v2407_v28 = vpop.f32.mrb[6].mxu1  ;;  %v2489_v39 = vpop.f32.mrb[10].mxu0 }
 0x34b   :  { %v2656_v40 = vmax.f32 %v3863_v32, 0.0  ;;  %v2658_v41 = vmax.f32 %v3865_v34, 0.0  ;;  %v2408_v58 = vpop.f32.mrb[7].mxu1  ;;  %v2490_v42 = vpop.f32.mrb[11].mxu0 }
 0x34c   :  { %v2657_v43 = vmax.f32 %v3864_v37, 0.0  ;;  %v2659_v30 = vmax.f32 %v3866_v38, 0.0 }
 0x34d   :  { %v2664_v47 = vpack.c.bf16 %v2656_v40, %v2656_v40  ;;  %v2666_v48 = vpack.c.bf16 %v2658_v41, %v2658_v41 }
 0x34e   :  { %v2665_v44 = vpack.c.bf16 %v2657_v43, %v2657_v43  ;;  %v2667_v45 = vpack.c.bf16 %v2659_v30, %v2659_v30 }
 0x350   :  { %3223 = vmatprep.mubr.bf16.mxu1 %v2665_v44  ;;  %3263 = vmatprep.mubr.bf16.mxu0 %v2667_v45  ;;  %v3710_v44 = vld [vmem:[%s4465_s8] ss:$0 sm:$0xff]  ;;  %s4244_s8 = smov [#allocation11]  }
 0x351   :  { %3224 = vmatmul.mubr.bf16.vlgmr.msra.gmra.mrb[12].mxu1 %v2664_v47  ;;  %3264 = vmatmul.mubr.bf16.vlgmr.msra.gmra.mrb[16].mxu0 %v2666_v48  ;;  %s3363_s1 = sshll.u32 %s4244_s8, 4  ;;  %s3364_s1 = int_to_ptr.vmem [resolvable:$true] %s3363_s1 }
 0x352   :  { %3820 = vmatpush3.bf16.msra.mxu1 %v4056_v46  ;;  %3842 = vmatpush3.bf16.msra.mxu0 %v4057_v50  ;;  %s4200_s10 = scalar_lea.vmem %s3364_s1, 128  ;;  %p4205_p13 = scmp.lt.s32.totalorder %s3364_s1, %s3364_s1 }
 0x353   :  { %3821 = vmatprep.subr.bf16.mxu1 %v4058_v51  ;;  %3843 = vmatprep.subr.bf16.mxu0 %v4059_v52  ;;  %p4201_p12 = scmp.ne.s32.totalorder %s3364_s1, %s4200_s10  ;;  %p4206_p0 = scmp.lt.s32.totalorder %s4200_s10, %s4200_s10 }
 0x355   :  { %p4207_p1 = por %p4206_p0, %p4205_p13 }
 0x356   :  { %3822 = vmatpush3.bf16.msra.mxu1 %v4060_v53  ;;  %3844 = vmatpush3.bf16.msra.mxu0 %v4061_v54 }
 0x357   :  { %3823 = vmatprep.subr.bf16.mxu1 %v4062_v56  ;;  %3845 = vmatprep.subr.bf16.mxu0 %v4063_v57  ;;  %p4208_p2 = pnand %p4207_p1, %p4201_p12 }
 0x35a   :  { %3824 = vmatpush3.bf16.msra.mxu1 %v4064_v8  ;;  %3846 = vmatpush3.bf16.msra.mxu0 %v4065_v59 }
 0x35b   :  { %3825 = vmatprep.subr.bf16.mxu1 %v4066_v60  ;;  %3847 = vmatprep.subr.bf16.mxu0 %v4067_v61 }
 0x35e   :  { %3826 = vmatpush3.bf16.msra.mxu1 %v4068_v62  ;;  %3848 = vmatpush3.bf16.msra.mxu0 %v4069_v63 }
 0x35f   :  { %3827 = vmatprep.subr.bf16.mxu1 %v4070_v0  ;;  %3849 = vmatprep.subr.bf16.mxu0 %v4071_v1 }
 0x362   :  { %3828 = vmatpush3.bf16.msra.mxu1 %v4072_v2  ;;  %3850 = vmatpush3.bf16.msra.mxu0 %v4073_v3 }
 0x363   :  { %3829 = vmatprep.subr.bf16.mxu1 %v4074_v4  ;;  %3851 = vmatprep.subr.bf16.mxu0 %v4075_v33 }
 0x366   :  { %3830 = vmatpush3.bf16.msra.mxu1 %v4076_v9  ;;  %3852 = vmatpush3.bf16.msra.mxu0 %v4077_v5 }
 0x367   :  { %3831 = vmatprep.subr.bf16.mxu1 %v4078_v6  ;;  %3853 = vmatprep.subr.bf16.mxu0 %v4079_v7 }
 0x36a   :  { %3832 = vmatpush3.bf16.msra.mxu1 %v4080_v10  ;;  %3854 = vmatpush3.bf16.msra.mxu0 %v4081_v11 }
 0x36b   :  { %3833 = vmatprep.subr.bf16.mxu1 %v4082_v12  ;;  %3855 = vmatprep.subr.bf16.mxu0 %v4083_v16 }
 0x36e   :  { %3834 = vmatpush3.bf16.msra.mxu1 %v4084_v13  ;;  %3856 = vmatpush3.bf16.msra.mxu0 %v4085_v14 }
 0x3c8   :  { %v2567_v24 = vpop.f32.mrb[8].mxu1 }
 0x3c9   :  { %v3867_v25 = vadd.f32 %v2567_v24, %v1027_v19  ;;  %v2649_v26 = vpop.f32.mrb[12].mxu0  ;;  %v2569_v29 = vpop.f32.mrb[9].mxu1 }
 0x3ca   :  { %v3869_v55 = vadd.f32 %v2649_v26, %v1035_v20  ;;  %v3868_v31 = vadd.f32 %v2569_v29, %v1031_v21  ;;  %v2651_v32 = vpop.f32.mrb[13].mxu0  ;;  %v2571_v34 = vpop.f32.mrb[10].mxu1 }
 0x3cb   :  { %v2660_v35 = vmax.f32 %v3867_v25, 0.0  ;;  %v3870_v36 = vadd.f32 %v2651_v32, %v1039_v22  ;;  %v2653_v37 = vpop.f32.mrb[14].mxu0  ;;  %v2572_v27 = vpop.f32.mrb[11].mxu1 }
 0x3cc   :  { %v2662_v38 = vmax.f32 %v3869_v55, 0.0  ;;  %v2661_v28 = vmax.f32 %v3868_v31, 0.0  ;;  %v2654_v39 = vpop.f32.mrb[15].mxu0 }
 0x3cd   :  { %v2663_v40 = vmax.f32 %v3870_v36, 0.0  ;;  %v2668_v58 = vpack.c.bf16 %v2660_v35, %v2660_v35 }
 0x3ce   :  { %v2669_v41 = vpack.c.bf16 %v2661_v28, %v2661_v28  ;;  %v2670_v23 = vpack.c.bf16 %v2662_v38, %v2662_v38 }
 0x3cf   :  { %v2671_v42 = vpack.c.bf16 %v2663_v40, %v2663_v40 }
 0x3d0   :  { %3303 = vmatprep.mubr.bf16.mxu1 %v2669_v41 }
 0x3d1   :  { %3343 = vmatprep.mubr.bf16.mxu0 %v2671_v42  ;;  %3304 = vmatmul.mubr.bf16.vlgmr.msra.gmra.mrb[16].mxu1 %v2668_v58 }
 0x3d2   :  { %3344 = vmatmul.mubr.bf16.vlgmr.msra.gmra.mrb[20].mxu0 %v2670_v23 }
 0x424   :  { %v3791_v43 = vpop.f32.mrb[12].mxu1  ;;  %v3813_v30 = vpop.f32.mrb[16].mxu0 }
 0x425   :  { %v3792_v45 = vpop.f32.mrb[13].mxu1  ;;  %v3814_v46 = vpop.f32.mrb[17].mxu0 }
 0x426   :  { %v3793_v50 = vadd.f32 %v3792_v45, %v3791_v43  ;;  %v3815_v47 = vadd.f32 %v3814_v46, %v3813_v30  ;;  %v3794_v48 = vpop.f32.mrb[14].mxu1  ;;  %v3816_v51 = vpop.f32.mrb[18].mxu0 }
 0x427   :  { %v3795_v52 = vpop.f32.mrb[15].mxu1  ;;  %v3817_v53 = vpop.f32.mrb[19].mxu0 }
 0x428   :  { %v3226_v54 = vadd.f32 %v3793_v50, %v3710_v44 }
 0x42a   :  { %v3266_v56 = vadd.f32 %v3815_v47, %v3226_v54 }
 0x4a4   :  { %v3835_v57 = vpop.f32.mrb[16].mxu1 }
 0x4a5   :  { %v3857_v8 = vpop.f32.mrb[20].mxu0  ;;  %v3836_v59 = vpop.f32.mrb[17].mxu1 }
 0x4a6   :  { %v3837_v60 = vadd.f32 %v3836_v59, %v3835_v57  ;;  %v3858_v61 = vpop.f32.mrb[21].mxu0  ;;  %v3838_v62 = vpop.f32.mrb[18].mxu1 }
 0x4a7   :  { %v3859_v63 = vadd.f32 %v3858_v61, %v3857_v8  ;;  %v3860_v0 = vpop.f32.mrb[22].mxu0  ;;  %v3839_v1 = vpop.f32.mrb[19].mxu1 }
 0x4a8   :  { %v3306_v2 = vadd.f32 %v3837_v60, %v3266_v56  ;;  %v3861_v3 = vpop.f32.mrb[23].mxu0 }
 0x4aa   :  { %v3346_v4 = vadd.f32 %v3859_v63, %v3306_v2 }
 0x4ac   :  { %v3351_v33 = vsub.f32 0.0, %v3346_v4 }
 0x4ae   :  { %v3352_v9 = vmul.f32 1.442695, %v3351_v33 }
 0x4b0   :  { %4086 = vpow2.f32 %v3352_v9 }
 0x4ba   :  { %v4087_v5 = vpop.eup %4086 }
 0x4bb   :  { %v3354_v6 = vadd.f32 1.0, %v4087_v5 }
 0x4bd   :  { %4088 = vrcp.f32 %v3354_v6 }
 0x4c7   :  { %v4089_v7 = vpop.eup %4088 }
 0x4c8   :  { %3356 = vst [vmem:[#allocation11] sm:$0xff] %v4089_v7 }
 0x4c9   :  { %4211 = shalt.err (!%p4208_p2)
}
 0x4ca   :  { %s4212_s14 = scalar_lea.hbm %s4466_s9, 128 }
 0x4cb   :  { %p4213_p3 = scmp.ne.s32.totalorder %s4466_s9, %s4212_s14  ;;  %p4216_p4 = scmp.lt.u32.totalorder %s4212_s14, %s4466_s9 }
 0x4cd   :  { %p4218_p5 = pnand %p4216_p4, %p4213_p3 }
 0x4cf   :  { %4221 = shalt.err (!%p4218_p5)
}
 0x4d0   :  { %3366 = dma.vmem_to_hbm [thread:$0]  %s3364_s1, 128, %s4466_s9, [#allocation4]  }
 0x4d1   :  { %4228 = dma.done.wait [#allocation4], 128  }
 0x4d2   :  { %4229 = vsyncadd [#allocation4], 4294967168 }
 0x4d3   :  { %3370 = vsyncpa [#allocation3], 1 }
 0x4d4   :  { %3371 = vsyncpa [#allocation6], 1 }
 0x4d5   :  { %3372 = vsyncpa [#allocation9], 1 }
 0x4d6   :  { %3373 = vsyncpa [#allocation4], 1 }

</bundles_post_ra>
